<compile_context>
chip_gen: v5e
topology: v5e:2x2
jax: 0.10.0
libtpu: 0.0.40
codegen_flags: <defaults>
</compile_context>

<pallas_src>
import functools
import numpy as np

import jax
import jax.numpy as jnp
from jax.experimental import pallas as pl
from jax.experimental.pallas import tpu as pltpu

LN_EPS = 1e-5
MXU_DTYPE = jnp.bfloat16
VMEM_LIMIT = 48 * 1024 * 1024          # below v7x's 64 MiB physical per-TC VMEM


def _layernorm_f32(x, w, b):
    """torch LayerNorm-in-fp32 semantics (biased variance, eps=1e-5)."""
    xf = x.astype(jnp.float32)
    mu = jnp.mean(xf, axis=-1, keepdims=True)
    var = jnp.mean(jnp.square(xf - mu), axis=-1, keepdims=True)
    y = (xf - mu) * jax.lax.rsqrt(var + LN_EPS)
    return y * w.astype(jnp.float32) + b.astype(jnp.float32)


# ----------------------------- Pallas kernels -----------------------------

def transformer_kernel(x_ref, lnp_w, lnp_b,
                       ln1_w, ln1_b, wqkv_ref, bqkv_ref, wo_ref, bo_ref,
                       ln2_w, ln2_b, wfc_ref, bfc_ref, wpr_ref, bpr_ref,
                       o_ref, acc_ref, h2_ref, oh_ref,
                       *, num_head, head_dim, valid_len):
    """One grid step = (batch b, layer l, MLP hidden tile n).

    The (Lp, D) activation for batch element b lives in the resident output block
    o_ref across all (l, n) steps.  Attention runs once per layer at n == 0; the
    MLP streams its (D,4D)/(4D,D) weights tile-by-tile into an f32 accumulator.
    """
    l = pl.program_id(1)
    n = pl.program_id(2)
    Lp, D = o_ref.shape

    # Very first step for this batch element: fused ln_pre initializes the carried
    # activation (output block is resident across l/n, written back to HBM once).
    @pl.when((l == 0) & (n == 0))
    def _():
        o_ref[...] = _layernorm_f32(x_ref[...], lnp_w[...], lnp_b[...]).astype(o_ref.dtype)

    # ---------------- attention: once per layer -------------------------------
    @pl.when(n == 0)
    def _():
        x = o_ref[...].astype(jnp.float32)
        h = _layernorm_f32(x, ln1_w[...], ln1_b[...]).astype(wqkv_ref.dtype)

        # Fused QKV projection: one lane-dense (Lp,D)@(D,3D) MXU matmul.
        # (1/sqrt(head_dim) already folded into the q part of wqkv/bqkv.)
        qkv = jnp.dot(h, wqkv_ref[...], preferred_element_type=jnp.float32)
        qkv = (qkv + bqkv_ref[...].astype(jnp.float32)).astype(MXU_DTYPE)   # (Lp, 3D) bf16

        # Key-padding mask as a single additive bias (built once, not per head).
        if valid_len < Lp:
            col = jax.lax.broadcasted_iota(jnp.int32, (1, Lp), 1)
            kbias = jnp.where(col < valid_len, 0.0, -1e30).astype(jnp.float32)
        else:
            kbias = None

        for hd in range(num_head):                     # static unrolled loop over heads
            lo = hd * head_dim
            q = qkv[:, lo:lo + head_dim]
            k = qkv[:, D + lo:D + lo + head_dim]
            v = qkv[:, 2 * D + lo:2 * D + lo + head_dim]
            s = jax.lax.dot_general(q, k, (((1,), (1,)), ((), ())),
                                    preferred_element_type=jnp.float32)     # (Lp, Lp)
            if kbias is not None:
                s = s + kbias
            s = s - jnp.max(s, axis=-1, keepdims=True)
            p = jnp.exp(s)
            p = p * pl.reciprocal(jnp.sum(p, axis=-1, keepdims=True), approx=True)
            # Write this head's output straight into its lane slice of the bf16 scratch.
            oh_ref[:, lo:lo + head_dim] = jnp.dot(
                p.astype(MXU_DTYPE), v,
                preferred_element_type=jnp.float32).astype(oh_ref.dtype)

        attn = jnp.dot(oh_ref[...], wo_ref[...], preferred_element_type=jnp.float32)
        x_attn = x + attn + bo_ref[...].astype(jnp.float32)

        o_ref[...] = x_attn.astype(o_ref.dtype)                              # residual base
        h2_ref[...] = _layernorm_f32(x_attn, ln2_w[...], ln2_b[...]).astype(h2_ref.dtype)
        acc_ref[...] = jnp.zeros_like(acc_ref)

    # ---------------- MLP: hidden tile n ---------------------------------------
    f = jnp.dot(h2_ref[...], wfc_ref[...], preferred_element_type=jnp.float32)
    f = f + bfc_ref[...].astype(jnp.float32)                                 # (Lp, tn)
    g = f * jax.nn.sigmoid(1.702 * f)                                        # QuickGELU
    acc_ref[...] += jnp.dot(g.astype(wpr_ref.dtype), wpr_ref[...],
                            preferred_element_type=jnp.float32)              # (Lp, D)

    @pl.when(n == pl.num_programs(2) - 1)
    def _():
        o_ref[...] = (o_ref[...].astype(jnp.float32) + acc_ref[...]
                      + bpr_ref[...].astype(jnp.float32)).astype(o_ref.dtype)


def post_kernel(x_ref, w_ref, b_ref, proj_ref, o_ref):
    """ln_post followed by the final projection: (N, D) -> (N, C)."""
    y = _layernorm_f32(x_ref[...], w_ref[...], b_ref[...])
    o_ref[...] = jnp.dot(y.astype(proj_ref.dtype), proj_ref[...],
                         preferred_element_type=jnp.float32).astype(o_ref.dtype)


# ----------------------------- wrappers -----------------------------------

def _pick_mlp_tile(Dh4, mlp_tile):
    if mlp_tile is not None:
        tn = mlp_tile
    elif Dh4 <= 2048:
        tn = Dh4
    else:
        tn = 2048
        while Dh4 % tn != 0 or tn % 128 != 0:
            tn -= 128
    assert Dh4 % tn == 0 and (tn % 128 == 0 or tn == Dh4)
    return tn


def pallas_transformer(x, kp, num_head, valid_len, mlp_tile=None):
    """x: (B, Lp, D) f32.  Runs ln_pre + all residual attention blocks."""
    B, Lp, D = x.shape
    NL = kp['wqkv'].shape[0]
    Dh4 = kp['wfc'].shape[2]
    head_dim = D // num_head
    tn = _pick_mlp_tile(Dh4, mlp_tile)
    NT = Dh4 // tn

    in_specs = [
        pl.BlockSpec((pl.Squeezed(), Lp, D), lambda b, l, n: (b, 0, 0)),      # x
        pl.BlockSpec((1, D), lambda b, l, n: (0, 0)),                          # ln_pre w
        pl.BlockSpec((1, D), lambda b, l, n: (0, 0)),                          # ln_pre b
        pl.BlockSpec((pl.Squeezed(), 1, D), lambda b, l, n: (l, 0, 0)),        # ln1_w
        pl.BlockSpec((pl.Squeezed(), 1, D), lambda b, l, n: (l, 0, 0)),        # ln1_b
        pl.BlockSpec((pl.Squeezed(), D, 3 * D), lambda b, l, n: (l, 0, 0)),    # wqkv
        pl.BlockSpec((pl.Squeezed(), 1, 3 * D), lambda b, l, n: (l, 0, 0)),    # bqkv
        pl.BlockSpec((pl.Squeezed(), D, D), lambda b, l, n: (l, 0, 0)),        # wo
        pl.BlockSpec((pl.Squeezed(), 1, D), lambda b, l, n: (l, 0, 0)),        # bo
        pl.BlockSpec((pl.Squeezed(), 1, D), lambda b, l, n: (l, 0, 0)),        # ln2_w
        pl.BlockSpec((pl.Squeezed(), 1, D), lambda b, l, n: (l, 0, 0)),        # ln2_b
        pl.BlockSpec((pl.Squeezed(), D, tn), lambda b, l, n: (l, 0, n)),       # wfc tile
        pl.BlockSpec((pl.Squeezed(), 1, tn), lambda b, l, n: (l, 0, n)),       # bfc tile
        pl.BlockSpec((pl.Squeezed(), tn, D), lambda b, l, n: (l, n, 0)),       # wpr tile
        pl.BlockSpec((pl.Squeezed(), 1, D), lambda b, l, n: (l, 0, 0)),        # bpr
    ]
    out_spec = pl.BlockSpec((pl.Squeezed(), Lp, D), lambda b, l, n: (b, 0, 0))

    kernel = functools.partial(transformer_kernel, num_head=num_head,
                               head_dim=head_dim, valid_len=valid_len)
    return pl.pallas_call(
        kernel,
        out_shape=jax.ShapeDtypeStruct((B, Lp, D), x.dtype),
        grid=(B, NL, NT),
        in_specs=in_specs,
        out_specs=out_spec,
        scratch_shapes=[pltpu.VMEM((Lp, D), jnp.float32),    # MLP c_proj accumulator
                        pltpu.VMEM((Lp, D), MXU_DTYPE),      # cached ln_2(x) (bf16)
                        pltpu.VMEM((Lp, D), MXU_DTYPE)],     # concatenated head outputs
        compiler_params=pltpu.CompilerParams(
            dimension_semantics=("parallel", "arbitrary", "arbitrary"),
            vmem_limit_bytes=VMEM_LIMIT),
    )(x, kp['ln_pre_w'], kp['ln_pre_b'],
      kp['ln1_w'], kp['ln1_b'], kp['wqkv'], kp['bqkv'], kp['wo'], kp['bo'],
      kp['ln2_w'], kp['ln2_b'], kp['wfc'], kp['bfc'], kp['wpr'], kp['bpr'])


def style_adapter_forward(x, kparams, num_head, num_token, mlp_tile=None):
    B, S, D = x.shape
    T = num_token
    C = kparams['proj'].shape[1]
    L = S + T
    Lp = ((L + 7) // 8) * 8                        # sublane-aligned token axis

    # concat learnable style tokens + pad (glue)
    se = jnp.broadcast_to(kparams['style_embedding'], (B, T, D)).astype(x.dtype)
    xc = jnp.concatenate([x, se], axis=1)          # (B, L, D)
    if Lp > L:
        xc = jnp.pad(xc, ((0, 0), (0, Lp - L), (0, 0)))

    # ln_pre + all transformer layers in one pipelined pallas_call
    xp = pallas_transformer(xc, kparams, num_head, valid_len=L, mlp_tile=mlp_tile)

    # last num_token (valid) tokens -> ln_post -> @ proj
    tail = xp[:, L - T:L, :].reshape(B * T, D)
    out = pl.pallas_call(
        post_kernel,
        out_shape=jax.ShapeDtypeStruct((B * T, C), x.dtype),
    )(tail, kparams['ln_post_w'], kparams['ln_post_b'], kparams['proj'])
    return out.reshape(B, T, C)


# -------------------------- params (torch layout) ---------------------------

def init_params(key, width, context_dim, num_head, n_layers, num_token):
    """f32 parameters in the PyTorch layout (Linear weights are (out, in))."""
    D = width
    scale = D ** -0.5
    ks = jax.random.split(key, 6 + n_layers)

    def nrm(k, shape, s=1.0):
        return s * jax.random.normal(k, shape, jnp.float32)

    params = {
        'style_embedding': nrm(ks[0], (1, num_token, D), scale),
        'proj': nrm(ks[1], (D, context_dim), scale),
        'ln_pre_w': 1.0 + nrm(ks[2], (D,), 0.05),
        'ln_pre_b': nrm(ks[3], (D,), 0.05),
        'ln_post_w': 1.0 + nrm(ks[4], (D,), 0.05),
        'ln_post_b': nrm(ks[5], (D,), 0.05),
        'layers': [],
    }
    for i in range(n_layers):
        lk = jax.random.split(ks[6 + i], 12)
        params['layers'].append({
            'ln1_w': 1.0 + nrm(lk[0], (D,), 0.05),
            'ln1_b': nrm(lk[1], (D,), 0.05),
            'in_proj_w': nrm(lk[2], (3 * D, D), scale),
            'in_proj_b': nrm(lk[3], (3 * D,), 0.02),
            'out_proj_w': nrm(lk[4], (D, D), scale),
            'out_proj_b': nrm(lk[5], (D,), 0.02),
            'ln2_w': 1.0 + nrm(lk[6], (D,), 0.05),
            'ln2_b': nrm(lk[7], (D,), 0.05),
            'c_fc_w': nrm(lk[8], (4 * D, D), scale),
            'c_fc_b': nrm(lk[9], (4 * D,), 0.02),
            'c_proj_w': nrm(lk[10], (D, 4 * D), (4 * D) ** -0.5),
            'c_proj_b': nrm(lk[11], (D,), 0.02),
        })
    return params


def prepare_kernel_params(params, num_head, mxu_dtype=MXU_DTYPE):
    """Fuse QKV, fold 1/sqrt(head_dim) into the q weights/bias, transpose to (in, out)
    layout, cast MXU weights to bf16, and stack all per-layer tensors along a leading
    layer axis so the kernel grid can index (and pipeline-prefetch) them by layer."""
    D = params['proj'].shape[0]
    Dh = D // num_head
    scale = Dh ** -0.5
    layers = params['layers']

    def stack(fn, dtype=None):
        a = jnp.stack([fn(lp) for lp in layers], axis=0)
        return a.astype(dtype) if dtype is not None else a

    def fuse_wqkv(lp):
        wq, wk, wv = jnp.split(lp['in_proj_w'], 3, axis=0)          # each (D, D)
        return jnp.concatenate([wq * scale, wk, wv], axis=0).T      # (D, 3D)

    def fuse_bqkv(lp):
        bq, bk, bv = jnp.split(lp['in_proj_b'], 3, axis=0)
        return jnp.concatenate([bq * scale, bk, bv]).reshape(1, 3 * D)

    return {
        'style_embedding': params['style_embedding'],
        'proj': params['proj'].astype(mxu_dtype),                   # bf16 final proj
        'ln_pre_w': params['ln_pre_w'].reshape(1, D),
        'ln_pre_b': params['ln_pre_b'].reshape(1, D),
        'ln_post_w': params['ln_post_w'].reshape(1, D),
        'ln_post_b': params['ln_post_b'].reshape(1, D),
        'ln1_w': stack(lambda lp: lp['ln1_w'].reshape(1, D)),
        'ln1_b': stack(lambda lp: lp['ln1_b'].reshape(1, D)),
        'wqkv': stack(fuse_wqkv, mxu_dtype),                        # (NL, D, 3D)
        'bqkv': stack(fuse_bqkv),                                   # (NL, 1, 3D) f32
        'wo': stack(lambda lp: lp['out_proj_w'].T, mxu_dtype),      # (NL, D, D)
        'bo': stack(lambda lp: lp['out_proj_b'].reshape(1, D)),
        'ln2_w': stack(lambda lp: lp['ln2_w'].reshape(1, D)),
        'ln2_b': stack(lambda lp: lp['ln2_b'].reshape(1, D)),
        'wfc': stack(lambda lp: lp['c_fc_w'].T, mxu_dtype),         # (NL, D, 4D)
        'bfc': stack(lambda lp: lp['c_fc_b'].reshape(1, 4 * D)),
        'wpr': stack(lambda lp: lp['c_proj_w'].T, mxu_dtype),       # (NL, 4D, D)
        'bpr': stack(lambda lp: lp['c_proj_b'].reshape(1, D)),
    }


# ----------------------------- plain-JAX reference -------------------------

def reference_forward(x, params, num_head, num_token):
    B, S, D = x.shape
    T = num_token
    H = num_head
    Dh = D // H
    L = S + T
    se = jnp.broadcast_to(params['style_embedding'], (B, T, D)).astype(x.dtype)
    x = jnp.concatenate([x, se], axis=1)
    x = _layernorm_f32(x, params['ln_pre_w'], params['ln_pre_b']).astype(x.dtype)
    scale = Dh ** -0.5
    for lp in params['layers']:
        h = _layernorm_f32(x, lp['ln1_w'], lp['ln1_b'])
        qkv = h @ lp['in_proj_w'].T + lp['in_proj_b']
        q, k, v = jnp.split(qkv, 3, axis=-1)
        q = q.reshape(B, L, H, Dh)
        k = k.reshape(B, L, H, Dh)
        v = v.reshape(B, L, H, Dh)
        s = jnp.einsum('blhd,bmhd->bhlm', q, k) * scale
        p = jax.nn.softmax(s, axis=-1)
        o = jnp.einsum('bhlm,bmhd->blhd', p, v).reshape(B, L, D)
        attn = o @ lp['out_proj_w'].T + lp['out_proj_b']
        x = x + attn
        h2 = _layernorm_f32(x, lp['ln2_w'], lp['ln2_b'])
        f = h2 @ lp['c_fc_w'].T + lp['c_fc_b']
        g = f * jax.nn.sigmoid(1.702 * f)
        x = x + (g @ lp['c_proj_w'].T + lp['c_proj_b'])
    tail = x[:, -T:, :]
    y = _layernorm_f32(tail, params['ln_post_w'], params['ln_post_b']).astype(x.dtype)
    return y @ params['proj']


# --------------------------------- main -------------------------------------

if __name__ == "__main__":
    # small, forward-consistent shapes (module defaults are width=1024, ctx=768, ...)
    width, context_dim, num_head, n_layers, num_token = 64, 32, 4, 2, 4
    B, S = 2, 8

    key = jax.random.PRNGKey(0)
    kparam, kx = jax.random.split(key)
    params = init_params(kparam, width, context_dim, num_head, n_layers, num_token)
    kparams = prepare_kernel_params(params, num_head)
    x = jax.random.normal(kx, (B, S, width), jnp.float32)

    # mlp_tile=128 -> 2 tiles over the 4*D hidden dim, exercising the accumulation grid.
    out = jax.block_until_ready(
        style_adapter_forward(x, kparams, num_head, num_token, mlp_tile=128))
    ref = jax.block_until_ready(reference_forward(x, params, num_head, num_token))

    assert out.shape == (B, num_token, context_dim), out.shape
    np.testing.assert_allclose(np.asarray(out), np.asarray(ref), rtol=2e-2, atol=2e-2)
    print("KERNEL_OK")
</pallas_src>

<mosaic_0001>
module attributes {stable_mosaic.version = 11 : i64} {
  func.func @transformer_kernel(%arg0: i32, %arg1: i32, %arg2: i32, %arg3: memref<1x16x64xf32, #tpu.memory_space<vmem>>, %arg4: memref<1x64xf32, #tpu.memory_space<vmem>>, %arg5: memref<1x64xf32, #tpu.memory_space<vmem>>, %arg6: memref<1x1x64xf32, #tpu.memory_space<vmem>>, %arg7: memref<1x1x64xf32, #tpu.memory_space<vmem>>, %arg8: memref<1x64x192xbf16, #tpu.memory_space<vmem>>, %arg9: memref<1x1x192xf32, #tpu.memory_space<vmem>>, %arg10: memref<1x64x64xbf16, #tpu.memory_space<vmem>>, %arg11: memref<1x1x64xf32, #tpu.memory_space<vmem>>, %arg12: memref<1x1x64xf32, #tpu.memory_space<vmem>>, %arg13: memref<1x1x64xf32, #tpu.memory_space<vmem>>, %arg14: memref<1x64x128xbf16, #tpu.memory_space<vmem>>, %arg15: memref<1x1x128xf32, #tpu.memory_space<vmem>>, %arg16: memref<1x128x64xbf16, #tpu.memory_space<vmem>>, %arg17: memref<1x1x64xf32, #tpu.memory_space<vmem>>, %arg18: memref<1x16x64xf32, #tpu.memory_space<vmem>>, %arg19: memref<16x64xf32, #tpu.memory_space<vmem>>, %arg20: memref<16x64xbf16, #tpu.memory_space<vmem>>, %arg21: memref<16x64xbf16, #tpu.memory_space<vmem>>) attributes {dimension_semantics = [#tpu.dimension_semantics<parallel>, #tpu.dimension_semantics<arbitrary>, #tpu.dimension_semantics<arbitrary>], iteration_bounds = array<i64: 2, 2, 2>, scalar_prefetch = 0 : i64, scratch_operands = 3 : i64, tpu.core_type = #tpu.core_type<tc>, window_params = [{transform_indices = @transform_0, window_bounds = array<i64: 1, 16, 64>}, {pipeline_mode = #tpu.pipeline_mode<synchronous>, transform_indices = @transform_1, window_bounds = array<i64: 1, 64>}, {pipeline_mode = #tpu.pipeline_mode<synchronous>, transform_indices = @transform_2, window_bounds = array<i64: 1, 64>}, {transform_indices = @transform_3, window_bounds = array<i64: 1, 1, 64>}, {transform_indices = @transform_4, window_bounds = array<i64: 1, 1, 64>}, {transform_indices = @transform_5, window_bounds = array<i64: 1, 64, 192>}, {transform_indices = @transform_6, window_bounds = array<i64: 1, 1, 192>}, {transform_indices = @transform_7, window_bounds = array<i64: 1, 64, 64>}, {transform_indices = @transform_8, window_bounds = array<i64: 1, 1, 64>}, {transform_indices = @transform_9, window_bounds = array<i64: 1, 1, 64>}, {transform_indices = @transform_10, window_bounds = array<i64: 1, 1, 64>}, {transform_indices = @transform_11, window_bounds = array<i64: 1, 64, 128>}, {transform_indices = @transform_12, window_bounds = array<i64: 1, 1, 128>}, {transform_indices = @transform_13, window_bounds = array<i64: 1, 128, 64>}, {transform_indices = @transform_14, window_bounds = array<i64: 1, 1, 64>}, {transform_indices = @transform_15, window_bounds = array<i64: 1, 16, 64>}]} {
    %c0_i32 = arith.constant 0 : i32
    %0 = arith.cmpi eq, %arg1, %c0_i32 : i32
    %c0_i32_0 = arith.constant 0 : i32
    %1 = arith.cmpi eq, %arg2, %c0_i32_0 : i32
    %2 = arith.andi %0, %1 : i1
    %3 = arith.extui %2 : i1 to i32
    %c0_i32_1 = arith.constant 0 : i32
    %4 = arith.cmpi ne, %3, %c0_i32_1 : i32
    scf.if %4 {
      %c0_22 = arith.constant 0 : index
      %c0_23 = arith.constant 0 : index
      %c0_24 = arith.constant 0 : index
      %34 = vector.load %arg3[%c0_22, %c0_23, %c0_24] : memref<1x16x64xf32, #tpu.memory_space<vmem>>, vector<1x16x64xf32>
      %35 = vector.shape_cast %34 : vector<1x16x64xf32> to vector<16x64xf32>
      %c0_25 = arith.constant 0 : index
      %c0_26 = arith.constant 0 : index
      %36 = vector.load %arg4[%c0_25, %c0_26] : memref<1x64xf32, #tpu.memory_space<vmem>>, vector<1x64xf32>
      %c0_27 = arith.constant 0 : index
      %c0_28 = arith.constant 0 : index
      %37 = vector.load %arg5[%c0_27, %c0_28] : memref<1x64xf32, #tpu.memory_space<vmem>>, vector<1x64xf32>
      %cst_29 = arith.constant dense<0.000000e+00> : vector<16xf32>
      %38 = vector.multi_reduction <add>, %35, %cst_29 [1] : vector<16x64xf32> to vector<16xf32>
      %39 = vector.shape_cast %38 : vector<16xf32> to vector<16x1xf32>
      %cst_30 = arith.constant 6.400000e+01 : f32
      %40 = vector.broadcast %cst_30 : f32 to vector<16x1xf32>
      %41 = arith.divf %39, %40 : vector<16x1xf32>
      %42 = vector.broadcast %41 : vector<16x1xf32> to vector<16x64xf32>
      %43 = arith.subf %35, %42 : vector<16x64xf32>
      %44 = arith.mulf %43, %43 : vector<16x64xf32>
      %cst_31 = arith.constant dense<0.000000e+00> : vector<16xf32>
      %45 = vector.multi_reduction <add>, %44, %cst_31 [1] : vector<16x64xf32> to vector<16xf32>
      %46 = vector.shape_cast %45 : vector<16xf32> to vector<16x1xf32>
      %cst_32 = arith.constant 6.400000e+01 : f32
      %47 = vector.broadcast %cst_32 : f32 to vector<16x1xf32>
      %48 = arith.divf %46, %47 : vector<16x1xf32>
      %49 = vector.broadcast %41 : vector<16x1xf32> to vector<16x64xf32>
      %50 = arith.subf %35, %49 : vector<16x64xf32>
      %cst_33 = arith.constant 9.99999974E-6 : f32
      %51 = vector.broadcast %cst_33 : f32 to vector<16x1xf32>
      %52 = arith.addf %48, %51 : vector<16x1xf32>
      %53 = math.rsqrt %52 : vector<16x1xf32>
      %54 = vector.broadcast %53 : vector<16x1xf32> to vector<16x64xf32>
      %55 = arith.mulf %50, %54 : vector<16x64xf32>
      %56 = vector.broadcast %36 : vector<1x64xf32> to vector<16x64xf32>
      %57 = arith.mulf %55, %56 : vector<16x64xf32>
      %58 = vector.broadcast %37 : vector<1x64xf32> to vector<16x64xf32>
      %59 = arith.addf %57, %58 : vector<16x64xf32>
      %c0_34 = arith.constant 0 : index
      %c0_35 = arith.constant 0 : index
      %c0_36 = arith.constant 0 : index
      %60 = vector.load %arg18[%c0_34, %c0_35, %c0_36] : memref<1x16x64xf32, #tpu.memory_space<vmem>>, vector<1x16x64xf32>
      %61 = vector.shape_cast %60 : vector<1x16x64xf32> to vector<16x64xf32>
      %62 = vector.shape_cast %59 : vector<16x64xf32> to vector<1x16x64xf32>
      tpu.vector_store %arg18[%c0_34, %c0_35, %c0_36], %62 {strides = array<i32>} : memref<1x16x64xf32, #tpu.memory_space<vmem>>, vector<1x16x64xf32>,
    } else {
    }
    %c0_i32_2 = arith.constant 0 : i32
    %5 = arith.cmpi eq, %arg2, %c0_i32_2 : i32
    %6 = arith.extui %5 : i1 to i32
    %c0_i32_3 = arith.constant 0 : i32
    %7 = arith.cmpi ne, %6, %c0_i32_3 : i32
    scf.if %7 {
      %c0_22 = arith.constant 0 : index
      %c0_23 = arith.constant 0 : index
      %c0_24 = arith.constant 0 : index
      %34 = vector.load %arg18[%c0_22, %c0_23, %c0_24] : memref<1x16x64xf32, #tpu.memory_space<vmem>>, vector<1x16x64xf32>
      %35 = vector.shape_cast %34 : vector<1x16x64xf32> to vector<16x64xf32>
      %c0_25 = arith.constant 0 : index
      %c0_26 = arith.constant 0 : index
      %c0_27 = arith.constant 0 : index
      %36 = vector.load %arg6[%c0_25, %c0_26, %c0_27] : memref<1x1x64xf32, #tpu.memory_space<vmem>>, vector<1x1x64xf32>
      %37 = vector.shape_cast %36 : vector<1x1x64xf32> to vector<1x64xf32>
      %c0_28 = arith.constant 0 : index
      %c0_29 = arith.constant 0 : index
      %c0_30 = arith.constant 0 : index
      %38 = vector.load %arg7[%c0_28, %c0_29, %c0_30] : memref<1x1x64xf32, #tpu.memory_space<vmem>>, vector<1x1x64xf32>
      %39 = vector.shape_cast %38 : vector<1x1x64xf32> to vector<1x64xf32>
      %cst_31 = arith.constant dense<0.000000e+00> : vector<16xf32>
      %40 = vector.multi_reduction <add>, %35, %cst_31 [1] : vector<16x64xf32> to vector<16xf32>
      %41 = vector.shape_cast %40 : vector<16xf32> to vector<16x1xf32>
      %cst_32 = arith.constant 6.400000e+01 : f32
      %42 = vector.broadcast %cst_32 : f32 to vector<16x1xf32>
      %43 = arith.divf %41, %42 : vector<16x1xf32>
      %44 = vector.broadcast %43 : vector<16x1xf32> to vector<16x64xf32>
      %45 = arith.subf %35, %44 : vector<16x64xf32>
      %46 = arith.mulf %45, %45 : vector<16x64xf32>
      %cst_33 = arith.constant dense<0.000000e+00> : vector<16xf32>
      %47 = vector.multi_reduction <add>, %46, %cst_33 [1] : vector<16x64xf32> to vector<16xf32>
      %48 = vector.shape_cast %47 : vector<16xf32> to vector<16x1xf32>
      %cst_34 = arith.constant 6.400000e+01 : f32
      %49 = vector.broadcast %cst_34 : f32 to vector<16x1xf32>
      %50 = arith.divf %48, %49 : vector<16x1xf32>
      %51 = vector.broadcast %43 : vector<16x1xf32> to vector<16x64xf32>
      %52 = arith.subf %35, %51 : vector<16x64xf32>
      %cst_35 = arith.constant 9.99999974E-6 : f32
      %53 = vector.broadcast %cst_35 : f32 to vector<16x1xf32>
      %54 = arith.addf %50, %53 : vector<16x1xf32>
      %55 = math.rsqrt %54 : vector<16x1xf32>
      %56 = vector.broadcast %55 : vector<16x1xf32> to vector<16x64xf32>
      %57 = arith.mulf %52, %56 : vector<16x64xf32>
      %58 = vector.broadcast %37 : vector<1x64xf32> to vector<16x64xf32>
      %59 = arith.mulf %57, %58 : vector<16x64xf32>
      %60 = vector.broadcast %39 : vector<1x64xf32> to vector<16x64xf32>
      %61 = arith.addf %59, %60 : vector<16x64xf32>
      %62 = arith.truncf %61 : vector<16x64xf32> to vector<16x64xbf16>
      %c0_36 = arith.constant 0 : index
      %c0_37 = arith.constant 0 : index
      %c0_38 = arith.constant 0 : index
      %63 = vector.load %arg8[%c0_36, %c0_37, %c0_38] : memref<1x64x192xbf16, #tpu.memory_space<vmem>>, vector<1x64x192xbf16>
      %64 = vector.shape_cast %63 : vector<1x64x192xbf16> to vector<64x192xbf16>
      %cst_39 = arith.constant dense<0.000000e+00> : vector<16x192xf32>
      %65 = tpu.matmul %62, %64, %cst_39 {dimension_numbers = #tpu.dot_dimension_numbers<[1], [0], [0], [1], [0, 0, 1, 1], [], []>} : vector<16x64xbf16>, vector<64x192xbf16>, vector<16x192xf32> -> vector<16x192xf32>
      %c0_40 = arith.constant 0 : index
      %c0_41 = arith.constant 0 : index
      %c0_42 = arith.constant 0 : index
      %66 = vector.load %arg9[%c0_40, %c0_41, %c0_42] : memref<1x1x192xf32, #tpu.memory_space<vmem>>, vector<1x1x192xf32>
      %67 = vector.shape_cast %66 : vector<1x1x192xf32> to vector<1x192xf32>
      %68 = vector.broadcast %67 : vector<1x192xf32> to vector<16x192xf32>
      %69 = arith.addf %65, %68 : vector<16x192xf32>
      %70 = arith.truncf %69 : vector<16x192xf32> to vector<16x192xbf16>
      %71 = tpu.iota {dimensions = array<i32: 1>} : vector<1x16xi32>
      %c12_i32 = arith.constant 12 : i32
      %72 = vector.broadcast %c12_i32 : i32 to vector<1x16xi32>
      %73 = arith.cmpi slt, %71, %72 : vector<1x16xi32>
      %cst_43 = arith.constant 0.000000e+00 : f32
      %cst_44 = arith.constant -1.000000e+30 : f32
      %74 = vector.broadcast %cst_43 : f32 to vector<1x16xf32>
      %75 = vector.broadcast %cst_44 : f32 to vector<1x16xf32>
      %76 = arith.select %73, %74, %75 : vector<1x16xi1>, vector<1x16xf32>
      %77 = vector.extract_strided_slice %70 {offsets = [0, 0], sizes = [16, 16], strides = [1, 1]} : vector<16x192xbf16> to vector<16x16xbf16>
      %78 = vector.extract_strided_slice %70 {offsets = [0, 64], sizes = [16, 16], strides = [1, 1]} : vector<16x192xbf16> to vector<16x16xbf16>
      %79 = vector.extract_strided_slice %70 {offsets = [0, 128], sizes = [16, 16], strides = [1, 1]} : vector<16x192xbf16> to vector<16x16xbf16>
      %cst_45 = arith.constant dense<0.000000e+00> : vector<16x16xf32>
      %80 = tpu.matmul %77, %78, %cst_45 {dimension_numbers = #tpu.dot_dimension_numbers<[1], [1], [0], [0], [0, 0, 1, 0], [], []>} : vector<16x16xbf16>, vector<16x16xbf16>, vector<16x16xf32> -> vector<16x16xf32>
      %81 = vector.broadcast %76 : vector<1x16xf32> to vector<16x16xf32>
      %82 = arith.addf %80, %81 : vector<16x16xf32>
      %cst_46 = arith.constant dense<0xFF800000> : vector<16xf32>
      %83 = vector.multi_reduction <maximumf>, %82, %cst_46 [1] : vector<16x16xf32> to vector<16xf32>
      %84 = vector.shape_cast %83 : vector<16xf32> to vector<16x1xf32>
      %85 = vector.broadcast %84 : vector<16x1xf32> to vector<16x16xf32>
      %86 = arith.subf %82, %85 : vector<16x16xf32>
      %87 = math.exp %86 : vector<16x16xf32>
      %cst_47 = arith.constant dense<0.000000e+00> : vector<16xf32>
      %88 = vector.multi_reduction <add>, %87, %cst_47 [1] : vector<16x16xf32> to vector<16xf32>
      %89 = vector.shape_cast %88 : vector<16xf32> to vector<16x1xf32>
      %90 = tpu.reciprocal %89 {approx = true} : vector<16x1xf32> -> vector<16x1xf32>
      %91 = vector.broadcast %90 : vector<16x1xf32> to vector<16x16xf32>
      %92 = arith.mulf %87, %91 : vector<16x16xf32>
      %93 = arith.truncf %92 : vector<16x16xf32> to vector<16x16xbf16>
      %cst_48 = arith.constant dense<0.000000e+00> : vector<16x16xf32>
      %94 = tpu.matmul %93, %79, %cst_48 {dimension_numbers = #tpu.dot_dimension_numbers<[1], [0], [0], [1], [0, 0, 1, 1], [], []>} : vector<16x16xbf16>, vector<16x16xbf16>, vector<16x16xf32> -> vector<16x16xf32>
      %95 = arith.truncf %94 : vector<16x16xf32> to vector<16x16xbf16>
      %c0_49 = arith.constant 0 : index
      %c0_50 = arith.constant 0 : index
      %96 = vector.load %arg21[%c0_49, %c0_50] : memref<16x64xbf16, #tpu.memory_space<vmem>>, vector<16x16xbf16>
      tpu.vector_store %arg21[%c0_49, %c0_50], %95 {strides = array<i32>} : memref<16x64xbf16, #tpu.memory_space<vmem>>, vector<16x16xbf16>,
      %97 = vector.extract_strided_slice %70 {offsets = [0, 16], sizes = [16, 16], strides = [1, 1]} : vector<16x192xbf16> to vector<16x16xbf16>
      %98 = vector.extract_strided_slice %70 {offsets = [0, 80], sizes = [16, 16], strides = [1, 1]} : vector<16x192xbf16> to vector<16x16xbf16>
      %99 = vector.extract_strided_slice %70 {offsets = [0, 144], sizes = [16, 16], strides = [1, 1]} : vector<16x192xbf16> to vector<16x16xbf16>
      %cst_51 = arith.constant dense<0.000000e+00> : vector<16x16xf32>
      %100 = tpu.matmul %97, %98, %cst_51 {dimension_numbers = #tpu.dot_dimension_numbers<[1], [1], [0], [0], [0, 0, 1, 0], [], []>} : vector<16x16xbf16>, vector<16x16xbf16>, vector<16x16xf32> -> vector<16x16xf32>
      %101 = vector.broadcast %76 : vector<1x16xf32> to vector<16x16xf32>
      %102 = arith.addf %100, %101 : vector<16x16xf32>
      %cst_52 = arith.constant dense<0xFF800000> : vector<16xf32>
      %103 = vector.multi_reduction <maximumf>, %102, %cst_52 [1] : vector<16x16xf32> to vector<16xf32>
      %104 = vector.shape_cast %103 : vector<16xf32> to vector<16x1xf32>
      %105 = vector.broadcast %104 : vector<16x1xf32> to vector<16x16xf32>
      %106 = arith.subf %102, %105 : vector<16x16xf32>
      %107 = math.exp %106 : vector<16x16xf32>
      %cst_53 = arith.constant dense<0.000000e+00> : vector<16xf32>
      %108 = vector.multi_reduction <add>, %107, %cst_53 [1] : vector<16x16xf32> to vector<16xf32>
      %109 = vector.shape_cast %108 : vector<16xf32> to vector<16x1xf32>
      %110 = tpu.reciprocal %109 {approx = true} : vector<16x1xf32> -> vector<16x1xf32>
      %111 = vector.broadcast %110 : vector<16x1xf32> to vector<16x16xf32>
      %112 = arith.mulf %107, %111 : vector<16x16xf32>
      %113 = arith.truncf %112 : vector<16x16xf32> to vector<16x16xbf16>
      %cst_54 = arith.constant dense<0.000000e+00> : vector<16x16xf32>
      %114 = tpu.matmul %113, %99, %cst_54 {dimension_numbers = #tpu.dot_dimension_numbers<[1], [0], [0], [1], [0, 0, 1, 1], [], []>} : vector<16x16xbf16>, vector<16x16xbf16>, vector<16x16xf32> -> vector<16x16xf32>
      %115 = arith.truncf %114 : vector<16x16xf32> to vector<16x16xbf16>
      %c0_55 = arith.constant 0 : index
      %c16 = arith.constant 16 : index
      %116 = vector.load %arg21[%c0_55, %c16] : memref<16x64xbf16, #tpu.memory_space<vmem>>, vector<16x16xbf16>
      tpu.vector_store %arg21[%c0_55, %c16], %115 {strides = array<i32>} : memref<16x64xbf16, #tpu.memory_space<vmem>>, vector<16x16xbf16>,
      %117 = vector.extract_strided_slice %70 {offsets = [0, 32], sizes = [16, 16], strides = [1, 1]} : vector<16x192xbf16> to vector<16x16xbf16>
      %118 = vector.extract_strided_slice %70 {offsets = [0, 96], sizes = [16, 16], strides = [1, 1]} : vector<16x192xbf16> to vector<16x16xbf16>
      %119 = vector.extract_strided_slice %70 {offsets = [0, 160], sizes = [16, 16], strides = [1, 1]} : vector<16x192xbf16> to vector<16x16xbf16>
      %cst_56 = arith.constant dense<0.000000e+00> : vector<16x16xf32>
      %120 = tpu.matmul %117, %118, %cst_56 {dimension_numbers = #tpu.dot_dimension_numbers<[1], [1], [0], [0], [0, 0, 1, 0], [], []>} : vector<16x16xbf16>, vector<16x16xbf16>, vector<16x16xf32> -> vector<16x16xf32>
      %121 = vector.broadcast %76 : vector<1x16xf32> to vector<16x16xf32>
      %122 = arith.addf %120, %121 : vector<16x16xf32>
      %cst_57 = arith.constant dense<0xFF800000> : vector<16xf32>
      %123 = vector.multi_reduction <maximumf>, %122, %cst_57 [1] : vector<16x16xf32> to vector<16xf32>
      %124 = vector.shape_cast %123 : vector<16xf32> to vector<16x1xf32>
      %125 = vector.broadcast %124 : vector<16x1xf32> to vector<16x16xf32>
      %126 = arith.subf %122, %125 : vector<16x16xf32>
      %127 = math.exp %126 : vector<16x16xf32>
      %cst_58 = arith.constant dense<0.000000e+00> : vector<16xf32>
      %128 = vector.multi_reduction <add>, %127, %cst_58 [1] : vector<16x16xf32> to vector<16xf32>
      %129 = vector.shape_cast %128 : vector<16xf32> to vector<16x1xf32>
      %130 = tpu.reciprocal %129 {approx = true} : vector<16x1xf32> -> vector<16x1xf32>
      %131 = vector.broadcast %130 : vector<16x1xf32> to vector<16x16xf32>
      %132 = arith.mulf %127, %131 : vector<16x16xf32>
      %133 = arith.truncf %132 : vector<16x16xf32> to vector<16x16xbf16>
      %cst_59 = arith.constant dense<0.000000e+00> : vector<16x16xf32>
      %134 = tpu.matmul %133, %119, %cst_59 {dimension_numbers = #tpu.dot_dimension_numbers<[1], [0], [0], [1], [0, 0, 1, 1], [], []>} : vector<16x16xbf16>, vector<16x16xbf16>, vector<16x16xf32> -> vector<16x16xf32>
      %135 = arith.truncf %134 : vector<16x16xf32> to vector<16x16xbf16>
      %c0_60 = arith.constant 0 : index
      %c32 = arith.constant 32 : index
      %136 = vector.load %arg21[%c0_60, %c32] : memref<16x64xbf16, #tpu.memory_space<vmem>>, vector<16x16xbf16>
      tpu.vector_store %arg21[%c0_60, %c32], %135 {strides = array<i32>} : memref<16x64xbf16, #tpu.memory_space<vmem>>, vector<16x16xbf16>,
      %137 = vector.extract_strided_slice %70 {offsets = [0, 48], sizes = [16, 16], strides = [1, 1]} : vector<16x192xbf16> to vector<16x16xbf16>
      %138 = vector.extract_strided_slice %70 {offsets = [0, 112], sizes = [16, 16], strides = [1, 1]} : vector<16x192xbf16> to vector<16x16xbf16>
      %139 = vector.extract_strided_slice %70 {offsets = [0, 176], sizes = [16, 16], strides = [1, 1]} : vector<16x192xbf16> to vector<16x16xbf16>
      %cst_61 = arith.constant dense<0.000000e+00> : vector<16x16xf32>
      %140 = tpu.matmul %137, %138, %cst_61 {dimension_numbers = #tpu.dot_dimension_numbers<[1], [1], [0], [0], [0, 0, 1, 0], [], []>} : vector<16x16xbf16>, vector<16x16xbf16>, vector<16x16xf32> -> vector<16x16xf32>
      %141 = vector.broadcast %76 : vector<1x16xf32> to vector<16x16xf32>
      %142 = arith.addf %140, %141 : vector<16x16xf32>
      %cst_62 = arith.constant dense<0xFF800000> : vector<16xf32>
      %143 = vector.multi_reduction <maximumf>, %142, %cst_62 [1] : vector<16x16xf32> to vector<16xf32>
      %144 = vector.shape_cast %143 : vector<16xf32> to vector<16x1xf32>
      %145 = vector.broadcast %144 : vector<16x1xf32> to vector<16x16xf32>
      %146 = arith.subf %142, %145 : vector<16x16xf32>
      %147 = math.exp %146 : vector<16x16xf32>
      %cst_63 = arith.constant dense<0.000000e+00> : vector<16xf32>
      %148 = vector.multi_reduction <add>, %147, %cst_63 [1] : vector<16x16xf32> to vector<16xf32>
      %149 = vector.shape_cast %148 : vector<16xf32> to vector<16x1xf32>
      %150 = tpu.reciprocal %149 {approx = true} : vector<16x1xf32> -> vector<16x1xf32>
      %151 = vector.broadcast %150 : vector<16x1xf32> to vector<16x16xf32>
      %152 = arith.mulf %147, %151 : vector<16x16xf32>
      %153 = arith.truncf %152 : vector<16x16xf32> to vector<16x16xbf16>
      %cst_64 = arith.constant dense<0.000000e+00> : vector<16x16xf32>
      %154 = tpu.matmul %153, %139, %cst_64 {dimension_numbers = #tpu.dot_dimension_numbers<[1], [0], [0], [1], [0, 0, 1, 1], [], []>} : vector<16x16xbf16>, vector<16x16xbf16>, vector<16x16xf32> -> vector<16x16xf32>
      %155 = arith.truncf %154 : vector<16x16xf32> to vector<16x16xbf16>
      %c0_65 = arith.constant 0 : index
      %c48 = arith.constant 48 : index
      %156 = vector.load %arg21[%c0_65, %c48] : memref<16x64xbf16, #tpu.memory_space<vmem>>, vector<16x16xbf16>
      tpu.vector_store %arg21[%c0_65, %c48], %155 {strides = array<i32>} : memref<16x64xbf16, #tpu.memory_space<vmem>>, vector<16x16xbf16>,
      %c0_66 = arith.constant 0 : index
      %c0_67 = arith.constant 0 : index
      %157 = vector.load %arg21[%c0_66, %c0_67] : memref<16x64xbf16, #tpu.memory_space<vmem>>, vector<16x64xbf16>
      %c0_68 = arith.constant 0 : index
      %c0_69 = arith.constant 0 : index
      %c0_70 = arith.constant 0 : index
      %158 = vector.load %arg10[%c0_68, %c0_69, %c0_70] : memref<1x64x64xbf16, #tpu.memory_space<vmem>>, vector<1x64x64xbf16>
      %159 = vector.shape_cast %158 : vector<1x64x64xbf16> to vector<64x64xbf16>
      %cst_71 = arith.constant dense<0.000000e+00> : vector<16x64xf32>
      %160 = tpu.matmul %157, %159, %cst_71 {dimension_numbers = #tpu.dot_dimension_numbers<[1], [0], [0], [1], [0, 0, 1, 1], [], []>} : vector<16x64xbf16>, vector<64x64xbf16>, vector<16x64xf32> -> vector<16x64xf32>
      %161 = arith.addf %35, %160 : vector<16x64xf32>
      %c0_72 = arith.constant 0 : index
      %c0_73 = arith.constant 0 : index
      %c0_74 = arith.constant 0 : index
      %162 = vector.load %arg11[%c0_72, %c0_73, %c0_74] : memref<1x1x64xf32, #tpu.memory_space<vmem>>, vector<1x1x64xf32>
      %163 = vector.shape_cast %162 : vector<1x1x64xf32> to vector<1x64xf32>
      %164 = vector.broadcast %163 : vector<1x64xf32> to vector<16x64xf32>
      %165 = arith.addf %161, %164 : vector<16x64xf32>
      %c0_75 = arith.constant 0 : index
      %c0_76 = arith.constant 0 : index
      %c0_77 = arith.constant 0 : index
      %166 = vector.load %arg18[%c0_75, %c0_76, %c0_77] : memref<1x16x64xf32, #tpu.memory_space<vmem>>, vector<1x16x64xf32>
      %167 = vector.shape_cast %166 : vector<1x16x64xf32> to vector<16x64xf32>
      %168 = vector.shape_cast %165 : vector<16x64xf32> to vector<1x16x64xf32>
      tpu.vector_store %arg18[%c0_75, %c0_76, %c0_77], %168 {strides = array<i32>} : memref<1x16x64xf32, #tpu.memory_space<vmem>>, vector<1x16x64xf32>,
      %c0_78 = arith.constant 0 : index
      %c0_79 = arith.constant 0 : index
      %c0_80 = arith.constant 0 : index
      %169 = vector.load %arg12[%c0_78, %c0_79, %c0_80] : memref<1x1x64xf32, #tpu.memory_space<vmem>>, vector<1x1x64xf32>
      %170 = vector.shape_cast %169 : vector<1x1x64xf32> to vector<1x64xf32>
      %c0_81 = arith.constant 0 : index
      %c0_82 = arith.constant 0 : index
      %c0_83 = arith.constant 0 : index
      %171 = vector.load %arg13[%c0_81, %c0_82, %c0_83] : memref<1x1x64xf32, #tpu.memory_space<vmem>>, vector<1x1x64xf32>
      %172 = vector.shape_cast %171 : vector<1x1x64xf32> to vector<1x64xf32>
      %cst_84 = arith.constant dense<0.000000e+00> : vector<16xf32>
      %173 = vector.multi_reduction <add>, %165, %cst_84 [1] : vector<16x64xf32> to vector<16xf32>
      %174 = vector.shape_cast %173 : vector<16xf32> to vector<16x1xf32>
      %cst_85 = arith.constant 6.400000e+01 : f32
      %175 = vector.broadcast %cst_85 : f32 to vector<16x1xf32>
      %176 = arith.divf %174, %175 : vector<16x1xf32>
      %177 = vector.broadcast %176 : vector<16x1xf32> to vector<16x64xf32>
      %178 = arith.subf %165, %177 : vector<16x64xf32>
      %179 = arith.mulf %178, %178 : vector<16x64xf32>
      %cst_86 = arith.constant dense<0.000000e+00> : vector<16xf32>
      %180 = vector.multi_reduction <add>, %179, %cst_86 [1] : vector<16x64xf32> to vector<16xf32>
      %181 = vector.shape_cast %180 : vector<16xf32> to vector<16x1xf32>
      %cst_87 = arith.constant 6.400000e+01 : f32
      %182 = vector.broadcast %cst_87 : f32 to vector<16x1xf32>
      %183 = arith.divf %181, %182 : vector<16x1xf32>
      %184 = vector.broadcast %176 : vector<16x1xf32> to vector<16x64xf32>
      %185 = arith.subf %165, %184 : vector<16x64xf32>
      %cst_88 = arith.constant 9.99999974E-6 : f32
      %186 = vector.broadcast %cst_88 : f32 to vector<16x1xf32>
      %187 = arith.addf %183, %186 : vector<16x1xf32>
      %188 = math.rsqrt %187 : vector<16x1xf32>
      %189 = vector.broadcast %188 : vector<16x1xf32> to vector<16x64xf32>
      %190 = arith.mulf %185, %189 : vector<16x64xf32>
      %191 = vector.broadcast %170 : vector<1x64xf32> to vector<16x64xf32>
      %192 = arith.mulf %190, %191 : vector<16x64xf32>
      %193 = vector.broadcast %172 : vector<1x64xf32> to vector<16x64xf32>
      %194 = arith.addf %192, %193 : vector<16x64xf32>
      %195 = arith.truncf %194 : vector<16x64xf32> to vector<16x64xbf16>
      %c0_89 = arith.constant 0 : index
      %c0_90 = arith.constant 0 : index
      %196 = vector.load %arg20[%c0_89, %c0_90] : memref<16x64xbf16, #tpu.memory_space<vmem>>, vector<16x64xbf16>
      tpu.vector_store %arg20[%c0_89, %c0_90], %195 {strides = array<i32>} : memref<16x64xbf16, #tpu.memory_space<vmem>>, vector<16x64xbf16>,
      %cst_91 = arith.constant 0.000000e+00 : f32
      %197 = vector.broadcast %cst_91 : f32 to vector<16x64xf32>
      %c0_92 = arith.constant 0 : index
      %c0_93 = arith.constant 0 : index
      %198 = vector.load %arg19[%c0_92, %c0_93] : memref<16x64xf32, #tpu.memory_space<vmem>>, vector<16x64xf32>
      tpu.vector_store %arg19[%c0_92, %c0_93], %197 {strides = array<i32>} : memref<16x64xf32, #tpu.memory_space<vmem>>, vector<16x64xf32>,
    } else {
    }
    %c0 = arith.constant 0 : index
    %c0_4 = arith.constant 0 : index
    %8 = vector.load %arg20[%c0, %c0_4] : memref<16x64xbf16, #tpu.memory_space<vmem>>, vector<16x64xbf16>
    %c0_5 = arith.constant 0 : index
    %c0_6 = arith.constant 0 : index
    %c0_7 = arith.constant 0 : index
    %9 = vector.load %arg14[%c0_5, %c0_6, %c0_7] : memref<1x64x128xbf16, #tpu.memory_space<vmem>>, vector<1x64x128xbf16>
    %10 = vector.shape_cast %9 : vector<1x64x128xbf16> to vector<64x128xbf16>
    %cst = arith.constant dense<0.000000e+00> : vector<16x128xf32>
    %11 = tpu.matmul %8, %10, %cst {dimension_numbers = #tpu.dot_dimension_numbers<[1], [0], [0], [1], [0, 0, 1, 1], [], []>} : vector<16x64xbf16>, vector<64x128xbf16>, vector<16x128xf32> -> vector<16x128xf32>
    %c0_8 = arith.constant 0 : index
    %c0_9 = arith.constant 0 : index
    %c0_10 = arith.constant 0 : index
    %12 = vector.load %arg15[%c0_8, %c0_9, %c0_10] : memref<1x1x128xf32, #tpu.memory_space<vmem>>, vector<1x1x128xf32>
    %13 = vector.shape_cast %12 : vector<1x1x128xf32> to vector<1x128xf32>
    %14 = vector.broadcast %13 : vector<1x128xf32> to vector<16x128xf32>
    %15 = arith.addf %11, %14 : vector<16x128xf32>
    %cst_11 = arith.constant 1.702000e+00 : f32
    %16 = vector.broadcast %cst_11 : f32 to vector<16x128xf32>
    %17 = arith.mulf %16, %15 : vector<16x128xf32>
    %18 = arith.negf %17 : vector<16x128xf32>
    %19 = math.exp %18 : vector<16x128xf32>
    %cst_12 = arith.constant 1.000000e+00 : f32
    %20 = vector.broadcast %cst_12 : f32 to vector<16x128xf32>
    %21 = arith.addf %20, %19 : vector<16x128xf32>
    %22 = arith.divf %20, %21 : vector<16x128xf32>
    %23 = arith.mulf %15, %22 : vector<16x128xf32>
    %c0_13 = arith.constant 0 : index
    %c0_14 = arith.constant 0 : index
    %24 = vector.load %arg19[%c0_13, %c0_14] : memref<16x64xf32, #tpu.memory_space<vmem>>, vector<16x64xf32>
    %25 = arith.truncf %23 : vector<16x128xf32> to vector<16x128xbf16>
    %c0_15 = arith.constant 0 : index
    %c0_16 = arith.constant 0 : index
    %c0_17 = arith.constant 0 : index
    %26 = vector.load %arg16[%c0_15, %c0_16, %c0_17] : memref<1x128x64xbf16, #tpu.memory_space<vmem>>, vector<1x128x64xbf16>
    %27 = vector.shape_cast %26 : vector<1x128x64xbf16> to vector<128x64xbf16>
    %cst_18 = arith.constant dense<0.000000e+00> : vector<16x64xf32>
    %28 = tpu.matmul %25, %27, %cst_18 {dimension_numbers = #tpu.dot_dimension_numbers<[1], [0], [0], [1], [0, 0, 1, 1], [], []>} : vector<16x128xbf16>, vector<128x64xbf16>, vector<16x64xf32> -> vector<16x64xf32>
    %29 = arith.addf %24, %28 : vector<16x64xf32>
    %c0_19 = arith.constant 0 : index
    %c0_20 = arith.constant 0 : index
    %30 = vector.load %arg19[%c0_19, %c0_20] : memref<16x64xf32, #tpu.memory_space<vmem>>, vector<16x64xf32>
    tpu.vector_store %arg19[%c0_19, %c0_20], %29 {strides = array<i32>} : memref<16x64xf32, #tpu.memory_space<vmem>>, vector<16x64xf32>,
    %c1_i32 = arith.constant 1 : i32
    %31 = arith.cmpi eq, %arg2, %c1_i32 : i32
    %32 = arith.extui %31 : i1 to i32
    %c0_i32_21 = arith.constant 0 : i32
    %33 = arith.cmpi ne, %32, %c0_i32_21 : i32
    scf.if %33 {
      %c0_22 = arith.constant 0 : index
      %c0_23 = arith.constant 0 : index
      %c0_24 = arith.constant 0 : index
      %34 = vector.load %arg18[%c0_22, %c0_23, %c0_24] : memref<1x16x64xf32, #tpu.memory_space<vmem>>, vector<1x16x64xf32>
      %35 = vector.shape_cast %34 : vector<1x16x64xf32> to vector<16x64xf32>
      %c0_25 = arith.constant 0 : index
      %c0_26 = arith.constant 0 : index
      %36 = vector.load %arg19[%c0_25, %c0_26] : memref<16x64xf32, #tpu.memory_space<vmem>>, vector<16x64xf32>
      %37 = arith.addf %35, %36 : vector<16x64xf32>
      %c0_27 = arith.constant 0 : index
      %c0_28 = arith.constant 0 : index
      %c0_29 = arith.constant 0 : index
      %38 = vector.load %arg17[%c0_27, %c0_28, %c0_29] : memref<1x1x64xf32, #tpu.memory_space<vmem>>, vector<1x1x64xf32>
      %39 = vector.shape_cast %38 : vector<1x1x64xf32> to vector<1x64xf32>
      %40 = vector.broadcast %39 : vector<1x64xf32> to vector<16x64xf32>
      %41 = arith.addf %37, %40 : vector<16x64xf32>
      %c0_30 = arith.constant 0 : index
      %c0_31 = arith.constant 0 : index
      %c0_32 = arith.constant 0 : index
      %42 = vector.load %arg18[%c0_30, %c0_31, %c0_32] : memref<1x16x64xf32, #tpu.memory_space<vmem>>, vector<1x16x64xf32>
      %43 = vector.shape_cast %42 : vector<1x16x64xf32> to vector<16x64xf32>
      %44 = vector.shape_cast %41 : vector<16x64xf32> to vector<1x16x64xf32>
      tpu.vector_store %arg18[%c0_30, %c0_31, %c0_32], %44 {strides = array<i32>} : memref<1x16x64xf32, #tpu.memory_space<vmem>>, vector<1x16x64xf32>,
    } else {
    }
    return
  }
  func.func @transform_0(%arg0: i32, %arg1: i32, %arg2: i32) -> (i32, i32, i32) {
    %c0_i32 = arith.constant 0 : i32
    %c0_i32_0 = arith.constant 0 : i32
    %c0_i32_1 = arith.constant 0 : i32
    return %arg0, %c0_i32, %c0_i32_0 : i32, i32, i32
  }
  func.func @transform_1(%arg0: i32, %arg1: i32, %arg2: i32) -> (i32, i32) {
    %c0_i32 = arith.constant 0 : i32
    %c0_i32_0 = arith.constant 0 : i32
    %c0_i32_1 = arith.constant 0 : i32
    return %c0_i32, %c0_i32_0 : i32, i32
  }
  func.func @transform_2(%arg0: i32, %arg1: i32, %arg2: i32) -> (i32, i32) {
    %c0_i32 = arith.constant 0 : i32
    %c0_i32_0 = arith.constant 0 : i32
    %c0_i32_1 = arith.constant 0 : i32
    return %c0_i32, %c0_i32_0 : i32, i32
  }
  func.func @transform_3(%arg0: i32, %arg1: i32, %arg2: i32) -> (i32, i32, i32) {
    %c0_i32 = arith.constant 0 : i32
    %c0_i32_0 = arith.constant 0 : i32
    %c0_i32_1 = arith.constant 0 : i32
    return %arg1, %c0_i32, %c0_i32_0 : i32, i32, i32
  }
  func.func @transform_4(%arg0: i32, %arg1: i32, %arg2: i32) -> (i32, i32, i32) {
    %c0_i32 = arith.constant 0 : i32
    %c0_i32_0 = arith.constant 0 : i32
    %c0_i32_1 = arith.constant 0 : i32
    return %arg1, %c0_i32, %c0_i32_0 : i32, i32, i32
  }
  func.func @transform_5(%arg0: i32, %arg1: i32, %arg2: i32) -> (i32, i32, i32) {
    %c0_i32 = arith.constant 0 : i32
    %c0_i32_0 = arith.constant 0 : i32
    %c0_i32_1 = arith.constant 0 : i32
    return %arg1, %c0_i32, %c0_i32_0 : i32, i32, i32
  }
  func.func @transform_6(%arg0: i32, %arg1: i32, %arg2: i32) -> (i32, i32, i32) {
    %c0_i32 = arith.constant 0 : i32
    %c0_i32_0 = arith.constant 0 : i32
    %c0_i32_1 = arith.constant 0 : i32
    return %arg1, %c0_i32, %c0_i32_0 : i32, i32, i32
  }
  func.func @transform_7(%arg0: i32, %arg1: i32, %arg2: i32) -> (i32, i32, i32) {
    %c0_i32 = arith.constant 0 : i32
    %c0_i32_0 = arith.constant 0 : i32
    %c0_i32_1 = arith.constant 0 : i32
    return %arg1, %c0_i32, %c0_i32_0 : i32, i32, i32
  }
  func.func @transform_8(%arg0: i32, %arg1: i32, %arg2: i32) -> (i32, i32, i32) {
    %c0_i32 = arith.constant 0 : i32
    %c0_i32_0 = arith.constant 0 : i32
    %c0_i32_1 = arith.constant 0 : i32
    return %arg1, %c0_i32, %c0_i32_0 : i32, i32, i32
  }
  func.func @transform_9(%arg0: i32, %arg1: i32, %arg2: i32) -> (i32, i32, i32) {
    %c0_i32 = arith.constant 0 : i32
    %c0_i32_0 = arith.constant 0 : i32
    %c0_i32_1 = arith.constant 0 : i32
    return %arg1, %c0_i32, %c0_i32_0 : i32, i32, i32
  }
  func.func @transform_10(%arg0: i32, %arg1: i32, %arg2: i32) -> (i32, i32, i32) {
    %c0_i32 = arith.constant 0 : i32
    %c0_i32_0 = arith.constant 0 : i32
    %c0_i32_1 = arith.constant 0 : i32
    return %arg1, %c0_i32, %c0_i32_0 : i32, i32, i32
  }
  func.func @transform_11(%arg0: i32, %arg1: i32, %arg2: i32) -> (i32, i32, i32) {
    %c0_i32 = arith.constant 0 : i32
    %c0_i32_0 = arith.constant 0 : i32
    return %arg1, %c0_i32, %arg2 : i32, i32, i32
  }
  func.func @transform_12(%arg0: i32, %arg1: i32, %arg2: i32) -> (i32, i32, i32) {
    %c0_i32 = arith.constant 0 : i32
    %c0_i32_0 = arith.constant 0 : i32
    return %arg1, %c0_i32, %arg2 : i32, i32, i32
  }
  func.func @transform_13(%arg0: i32, %arg1: i32, %arg2: i32) -> (i32, i32, i32) {
    %c0_i32 = arith.constant 0 : i32
    %c0_i32_0 = arith.constant 0 : i32
    return %arg1, %arg2, %c0_i32 : i32, i32, i32
  }
  func.func @transform_14(%arg0: i32, %arg1: i32, %arg2: i32) -> (i32, i32, i32) {
    %c0_i32 = arith.constant 0 : i32
    %c0_i32_0 = arith.constant 0 : i32
    %c0_i32_1 = arith.constant 0 : i32
    return %arg1, %c0_i32, %c0_i32_0 : i32, i32, i32
  }
  func.func @transform_15(%arg0: i32, %arg1: i32, %arg2: i32) -> (i32, i32, i32) {
    %c0_i32 = arith.constant 0 : i32
    %c0_i32_0 = arith.constant 0 : i32
    %c0_i32_1 = arith.constant 0 : i32
    return %arg0, %c0_i32, %c0_i32_0 : i32, i32, i32
  }
}

</mosaic_0001>

<bundles_post_ra>
// kernel: tpu_custom_call.1
= control target key start
LH: loop header
LB: loop body
LE: loop exit
PB: predicated region body
PF: predicated region fallthrough
CT: control target
= control target key end

     0   :  { %s2982_s0 = inlined_call_operand.vmem [shape: f32[2,16,64], index: 0, kind: input, shape index: {}]   ;;  %s2983_s1 = inlined_call_operand.vmem [shape: f32[1,64], index: 1, kind: input, shape index: {}]   ;;  %s2984_s2 = inlined_call_operand.vmem [shape: f32[1,64], index: 2, kind: input, shape index: {}]   ;;  %s2985_s3 = inlined_call_operand.vmem [shape: f32[2,1,64], index: 3, kind: input, shape index: {}]   ;;  %s2986_s4 = inlined_call_operand.vmem [shape: f32[2,1,64], index: 4, kind: input, shape index: {}]   ;;  %s2987_s5 = inlined_call_operand.vmem [shape: bf16[2,64,192], index: 5, kind: input, shape index: {}]   ;;  %s2988_s6 = inlined_call_operand.vmem [shape: f32[2,1,192], index: 6, kind: input, shape index: {}]   ;;  %s2989_s7 = inlined_call_operand.vmem [shape: bf16[2,64,64], index: 7, kind: input, shape index: {}]   ;;  %s2990_s8 = inlined_call_operand.vmem [shape: f32[2,1,64], index: 8, kind: input, shape index: {}]   ;;  %s2991_s9 = inlined_call_operand.vmem [shape: f32[2,1,64], index: 9, kind: input, shape index: {}]   ;;  %s2992_s10 = inlined_call_operand.vmem [shape: f32[2,1,64], index: 10, kind: input, shape index: {}]   ;;  %s2993_s11 = inlined_call_operand.vmem [shape: bf16[2,64,256], index: 11, kind: input, shape index: {}]   ;;  %s2994_s12 = inlined_call_operand.vmem [shape: f32[2,1,256], index: 12, kind: input, shape index: {}]   ;;  %s2995_s13 = inlined_call_operand.vmem [shape: bf16[2,256,64], index: 13, kind: input, shape index: {}]   ;;  %s2996_s14 = inlined_call_operand.vmem [shape: f32[2,1,64], index: 14, kind: input, shape index: {}]   ;;  %s2997_s15 = inlined_call_operand.hbm [shape: f32[2,16,64], index: 15, kind: output, shape index: {}]  }
   0x1   :  { %3017 = sst [smem:[#allocation26_spill]] %s2982_s0 }
   0x2   :  { %3018 = sst [smem:[#allocation27_spill]] %s2983_s1 }
   0x3   :  { %3019 = sst [smem:[#allocation28_spill]] %s2984_s2 }
   0x4   :  { %3020 = sst [smem:[#allocation29_spill]] %s2987_s5 }
   0x5   :  { %3021 = sst [smem:[#allocation30_spill]] %s2988_s6 }
   0x6   :  { %3022 = sst [smem:[#allocation31_spill]] %s2989_s7 }
   0x7   :  { %3023 = sst [smem:[#allocation32_spill]] %s2990_s8 }
   0x8   :  { %3024 = sst [smem:[#allocation33_spill]] %s2991_s9 }
   0x9   :  { %3025 = sst [smem:[#allocation34_spill]] %s2992_s10 }
   0xa   :  { %3026 = sst [smem:[#allocation35_spill]] %s2993_s11 }
   0xb   :  { %3027 = sst [smem:[#allocation36_spill]] %s2994_s12 }
   0xc   :  { %3028 = sst [smem:[#allocation37_spill]] %s2995_s13 }
   0xd   :  { %3029 = sst [smem:[#allocation38_spill]] %s2996_s14 }
   0xe   :  { %3030 = sst [smem:[#allocation39_spill]] %s2997_s15 }
   0xf   :  { %20 = vsyncpa [#allocation7], 0 }
  0x10   :  { %22 = vsyncpa [#allocation7 + $0x1], 0  ;;  %s2516_s18 = smov 0   ;;  %s2518_s19 = smov 0  }
  0x11   :  { %s2520_s20 = smov 0   ;;  %s2522_s21 = smov 0  }
  0x12   :  { %s2524_s22 = smov 0   ;;  %s2526_s23 = smov 0  }
  0x13   :  { %s2528_s24 = smov 0   ;;  %s2530_s25 = smov 0  }
  0x14   :  { %s2532_s26 = smov 0   ;;  %s2534_s27 = smov 0  }
  0x15   :  { %s2536_s28 = smov 0   ;;  %s2538_s29 = smov 0  }
  0x16 LB: > { %3031 = sst [smem:[#allocation9_spill]] %s2377_s18  ;;  %s1938_s30 = sadd.s32 4294967295, %s2421_s29   ;;  %s2421_s29 = sphi %s2538_s29, %s28_s29   ;;  %s2417_s28 = sphi %s2536_s28, %s3093_s28   ;;  %s2413_s27 = sphi %s2534_s27, %s3092_s27   ;;  %s2409_s26 = sphi %s2532_s26, %s3091_s26   ;;  %s2405_s25 = sphi %s2530_s25, %s3090_s25   ;;  %s2401_s24 = sphi %s2528_s24, %s3089_s24   ;;  %s2397_s23 = sphi %s2526_s23, %s3088_s23   ;;  %s2393_s22 = sphi %s2524_s22, %s3087_s22   ;;  %s2389_s21 = sphi %s2522_s21, %s3086_s21   ;;  %s2385_s20 = sphi %s2520_s20, %s3085_s20   ;;  %s2381_s19 = sphi %s2518_s19, %s3084_s19   ;;  %s2377_s18 = sphi %s2516_s18, %s3083_s18  }
  0x17   : > { %3032 = sst [smem:[#allocation10_spill]] %s2381_s19  ;;  %s1939_s16 = sadd.s32 4294967294, %s2421_s29  }
  0x18   : > { %3033 = sst [smem:[#allocation11_spill]] %s2385_s20  ;;  %s40_s17 = sadd.s32 1, %s2409_s26 }
  0x19   : > { %3034 = sst [smem:[#allocation12_spill]] %s2393_s22  ;;  %s43_s15 = sadd.s32 1, %s2413_s27 }
  0x1a   : > { %3035 = sst [smem:[#allocation13_spill]] %s2405_s25  ;;  %p41_p0 = scmp.ge.s32.totalorder %s40_s17, 2 }
  0x1b   : > { %3036 = sst [smem:[#allocation14_spill]] %s2409_s26  ;;  %s47_s2 = sadd.s32 1, %s2417_s28 }
  0x1c   : > { %3037 = sst [smem:[#allocation15_spill]] %s2413_s27  ;;  %s332_s1 = sadd.s32 1, %s2393_s22 }
  0x1d   : > { %3038 = sst [smem:[#allocation16_spill]] %s2417_s28  ;;  %p339_p1 = scmp.ne.s32.totalorder %s2393_s22, %s2389_s21 }
  0x1e   : > { %3039 = sst [smem:[#allocation17_spill]] %s2421_s29  ;;  %s3095_s17 = smov (%p41_p0, %s40_s17), 0 }
  0x1f   : > { %3040 = sst [smem:[#allocation18_spill]] %s3095_s17  ;;  %s3097_s15 = smov (!%p41_p0, %s43_s15), %s2413_s27 }
  0x20   : > { %s328_s13 = ssub.s32 %s2409_s26, %s3095_s17  ;;  %p340_p2 = scmp.eq.s32.totalorder %s2421_s29, 0 }
  0x21   : > { %p45_p3 = scmp.ge.s32.totalorder %s3097_s15, 2  ;;  %s440_s12 = sadd.s32 1, %s2385_s20 }
  0x22   : > { %p2591_p4 = por %p340_p2, %p339_p1  ;;  %p450_p5 = scmp.ne.s32.totalorder %s2385_s20, %s2381_s19 }
  0x23   : > { %s3099_s15 = smov (%p45_p3, %s3097_s15), 0  ;;  %s3101_s2 = smov (!%p45_p3, %s47_s2), %s2417_s28 }
  0x24   : > { %3042 = sst [smem:[#allocation19_spill]] %s3099_s15  ;;  %s327_s10 = ssub.s32 %s2413_s27, %s3099_s15 }
  0x25   : > { %p451_p6 = scmp.eq.s32.totalorder %s1938_s30, 7  ;;  %p49_p7 = scmp.ge.s32.totalorder %s3101_s2, 2 }
  0x26   : > { %s329_s17 = sor.u32 %s328_s13, %s327_s10  ;;  %p456_p10 = scmp.ne.s32.totalorder %s2381_s19, %s2377_s18 }
  0x27   : > { %p330_p8 = scmp.eq.s32.totalorder %s329_s17, 0  ;;  %p2602_p9 = por %p451_p6, %p450_p5 }
  0x28   : > { %s3103_s2 = smov (%p49_p7, %s3101_s2), 0  ;;  %p457_p12 = scmp.eq.s32.totalorder %s1939_s16, 7 }
  0x29   : > { %s3043_s9 = scalar_select %p2602_p9, 1, 0 }
  0x2a   : > { %3045 = sst [smem:[#allocation21_spill]] %s3103_s2  ;;  %s437_s7 = ssub.s32 %s2417_s28, %s3103_s2 }
  0x2b   : > { %3044 = sst [smem:[#allocation20_spill]] %s3043_s9  ;;  %p438_p11 = scmp.eq.s32.totalorder %s437_s7, 0 }
  0x2c   : > { %s2609_s8 = scalar_select %p330_p8, %s2393_s22, %s332_s1  }
  0x2d   : > { %s2616_s6 = scalar_select %p438_p11, %s2385_s20, %s440_s12  }
  0x2e   : > { %3046 = sst [smem:[#allocation22_spill]] %s2609_s8  ;;  %p2618_p13 = por %p457_p12, %p456_p10 }
  0x2f   : > { %3047 = sst [smem:[#allocation23_spill]] %s2616_s6  ;;  %p1941_p0 = scmp.ge.s32.totalorder %s2421_s29, 8 }
  0x30   : > { %s3048_s30 = scalar_select %p2618_p13, 1, 0 }
  0x31   : > { %479 = sbr.rel (%p1941_p0) target bundleno = 72 (0x48), region = 24 }
  0x32   : > { %3049 = sst [smem:[#allocation24_spill]] %s3048_s30 }
  0x36   : > { %543 = sbr.rel (!%p2591_p4) target bundleno = 72 (0x48), region = 64  ;;  %s545_s1 = sand.u32 (%p2591_p4), 1, %s2393_s22  }
  0x37   : > { %s1943_s10 = sshll.u32 (%p2591_p4), %s2413_s27, 4  ;;  %s1942_s13 = sshll.u32 (%p2591_p4), %s545_s1, 5 }
  0x38   : > { %s549_s7 = sadd.s32 (%p2591_p4), %s2409_s26, %s1943_s10  ;;  %s3050_s11 = sld [smem:[#allocation35_spill]] (%p2591_p4) }
  0x39   : > { %s1944_s16 = sshll.u32 (%p2591_p4), %s549_s7, 2  ;;  %s547_s15 = scalar_lea.vmem (%p2591_p4), [#allocation5], %s1942_s13 }
  0x3e   : > { %s551_s2 = scalar_lea.vmem %s3050_s11, %s1944_s16 }
  0x3f   : > { %v568_v0 = vld [vmem:[%s551_s2] sm:$0xf]  ;;  %v570_v1 = vld [vmem:[%s551_s2 + $0x8] sm:$0xf]  ;;  %v572_v2 = vld [vmem:[%s551_s2 + $0x10] sm:$0xf] }
  0x40   : > { %569 = vst [vmem:[%s547_s15] sm:$0xf] %v568_v0  ;;  %v574_v3 = vld [vmem:[%s551_s2 + $0x18] sm:$0xf]  ;;  %v576_v4 = vld [vmem:[%s551_s2 + $0x20] sm:$0xf] }
  0x41   : > { %571 = vst [vmem:[%s547_s15 + $0x4] sm:$0xf] %v570_v1  ;;  %v578_v5 = vld [vmem:[%s551_s2 + $0x28] sm:$0xf]  ;;  %v580_v6 = vld [vmem:[%s551_s2 + $0x30] sm:$0xf] }
  0x42   : > { %573 = vst [vmem:[%s547_s15 + $0x8] sm:$0xf] %v572_v2  ;;  %v582_v7 = vld [vmem:[%s551_s2 + $0x38] sm:$0xf] }
  0x43   : > { %575 = vst [vmem:[%s547_s15 + $0xc] sm:$0xf] %v574_v3 }
  0x44   : > { %577 = vst [vmem:[%s547_s15 + $0x10] sm:$0xf] %v576_v4 }
  0x45   : > { %579 = vst [vmem:[%s547_s15 + $0x14] sm:$0xf] %v578_v5 }
  0x46   : > { %581 = vst [vmem:[%s547_s15 + $0x18] sm:$0xf] %v580_v6 }
  0x47   : > { %583 = vst [vmem:[%s547_s15 + $0x1c] sm:$0xf] %v582_v7 }
  0x48 PF: > { %p1945_p1 = scmp.ge.s32.totalorder %s2421_s29, 1  ;;  %p651_p2 = scmp.lt.s32.totalorder %s2421_s29, 9 }
  0x4a   : > { %p652_p3 = pnand %p1945_p1, %p651_p2 }
  0x4c   : > { %655 = sbr.rel (%p652_p3) target bundleno = 2786 (0xae2), region = 117 }
  0x51   : > { %s658_s2 = sand.u32 1, %s2389_s21   ;;  %s3002_s14 = sand.u32 1, %s2381_s19  }
  0x52   : > { %s2635_s15 = sshll.u32 %s658_s2, 5  ;;  %s2639_s1 = sshll.u32 %s3002_s14, 4 }
  0x53   : > { %p758_p4 = scmp.lt.s32.totalorder %s2405_s25, 1  ;;  %p763_p5 = scmp.lt.s32.totalorder %s2401_s24, 1 }
  0x54   : > { %p794_p6 = scmp.lt.s32.totalorder %s2397_s23, 1  ;;  %s1956_s10 = sshll.u32 %s2397_s23, 4 }
  0x55   : > { %s759_s13 = scalar_select %p758_p4, %s2405_s25, 1 }
  0x56   : > { %s2647_s7 = scalar_select %p763_p5, %s2401_s24, 1 }
  0x57   : > { %s2084_s21 = sshll.u32 %s759_s13, 4  ;;  %p2649_p7 = scmp.lt.s32.totalorder %s1956_s10, 31 }
  0x58   : > { %s3052_s0 = sld [smem:[#allocation26_spill]]  ;;  %s2085_s22 = sshll.u32 %s2647_s7, 6 }
  0x59   : > { %s3053_s5 = sld [smem:[#allocation29_spill]]  ;;  %s1952_s30 = sshll.u32 %s2647_s7, 1 }
  0x5a   : > { %s3054_s18 = sld [smem:[#allocation30_spill]]  ;;  %s2086_s11 = sshll.u32 %s2647_s7, 5 }
  0x5b   : > { %s3058_s29 = sld [smem:[#allocation33_spill]]  ;;  %s3105_s10 = smov (!%p2649_p7, %s1956_s10), 31 }
  0x5c   : > { %s795_s25 = scalar_select %p794_p6, %s2397_s23, 1 }
  0x5d   : > { %p813_p8 = scmp.eq.s32.totalorder %s2401_s24, 0  ;;  %p814_p10 = scmp.eq.s32.totalorder %s2397_s23, 0 }
  0x5e   : > { %s762_s2 = scalar_lea.vmem %s3052_s0, %s2084_s21  ;;  %s3055_s0 = sld [smem:[#allocation31_spill]] }
  0x5f   : > { %s2668_s20 = scalar_lea.vmem %s3053_s5, %s2085_s22  ;;  %s2699_s28 = sadd.s32 %s1952_s30, %s795_s25 }
  0x60   : > { %s2674_s21 = scalar_lea.vmem %s3054_s18, %s1952_s30  ;;  %s3061_s22 = sld [smem:[#allocation36_spill]] }
  0x61   : > { %s788_s9 = scalar_lea.vmem %s3058_s29, %s2647_s7  ;;  %s805_s29 = sadd.s32 %s2086_s11, %s3105_s10 }
  0x62   : > { %s1958_s13 = sshll.u32 %s805_s29, 2  ;;  %s3062_s18 = sld [smem:[#allocation37_spill]] }
  0x63   : > { %p815_p11 = pnand %p814_p10, %p813_p8  ;;  %s2717_s25 = scalar_lea.vmem [#allocation5], %s2635_s15 }
  0x64   : > { %s2680_s26 = scalar_lea.vmem %s3055_s0, %s2086_s11  ;;  %s2720_s30 = scalar_lea.vmem [#allocation6], %s2639_s1 }
  0x65   : > { %3056 = sst [smem:[#allocation25_spill]] %s2680_s26 }
  0x66   : > { %s3060_s26 = sld [smem:[#allocation38_spill]]  ;;  %s798_s5 = scalar_lea.vmem %s3061_s22, %s2699_s28 }
  0x67   : > { %s3063_s1 = sld [smem:[#allocation27_spill]] (!%p815_p11) }
  0x68   : > { %s2713_s19 = scalar_lea.vmem %s3062_s18, %s1958_s13  ;;  %818 = sbr.rel (%p815_p11) target bundleno = 387 (0x183), region = 125 }
  0x6c   : > { %s811_s8 = scalar_lea.vmem %s3060_s26, %s2647_s7 }
  0x6d   : > { %v819_v8 = vld [vmem:[%s762_s2] sm:$0xff]  ;;  %vm823_vm0 = vcmask 523264   ;;  %v820_v10 = vld [vmem:[%s762_s2 + $0x8] sm:$0xff]  ;;  %v2423_v12 = vmov 64.0   ;;  %s3064_s2 = sld [smem:[#allocation28_spill]] }
  0x6e   : > { %v824_v9 = vsel %vm823_vm0, %v819_v8, 0.0  ;;  %v827_v11 = vsel %vm823_vm0, %v820_v10, 0.0  ;;  %2232 = vrcp.f32 %v2423_v12  ;;  %v2230_v43 = vld [vmem:[%s3063_s1] ss:$0 sm:$0xff] }
  0x6f   : > { %825 = vadd.xlane.f32.xlu0 %v824_v9 }
  0x73   : > { %v2231_v46 = vld [vmem:[%s3064_s2] ss:$0 sm:$0xff] }
  0x74   : > { %v2233_v13 = vpop.eup %2232 }
  0x75   : > { %v831_v14 = vmul.f32 64.0, %v2233_v13  ;;  %vm835_vm1 = vweird.f32 %v2233_v13 }
  0x77   : > { %828 = vadd.xlane.f32.xlu0 %v827_v11  ;;  %v832_v15 = vsub.f32 1.0, %v831_v14 }
  0x79   : > { %v833_v16 = vmul.f32 %v2233_v13, %v832_v15 }
  0x7b   : > { %v834_v17 = vadd.f32 %v2233_v13, %v833_v16 }
  0x7d   : > { %v836_v18 = vsel %vm835_vm1, %v2233_v13, %v834_v17 }
  0xe2   : > { %v826_v19 = vpop.xlane.xlu0 %825 }
  0xe3   : > { %v837_v20 = vmul.f32 %v836_v18, %v826_v19 }
  0xe5   : > { %v839_v21 = vsub.f32 %v819_v8, %v837_v20 }
  0xe7   : > { %v841_v22 = vmul.f32 %v839_v21, %v839_v21 }
  0xe9   : > { %v843_v23 = vsel %vm823_vm0, %v841_v22, 0.0 }
  0xea   : > { %844 = vadd.xlane.f32.xlu1 %v843_v23  ;;  %v829_v24 = vpop.xlane.xlu0 %828 }
  0xeb   : > { %v838_v25 = vmul.f32 %v836_v18, %v829_v24 }
  0xed   : > { %v840_v26 = vsub.f32 %v820_v10, %v838_v25 }
  0xef   : > { %v842_v27 = vmul.f32 %v840_v26, %v840_v26 }
  0xf1   : > { %v846_v28 = vsel %vm823_vm0, %v842_v27, 0.0 }
  0xf2   : > { %847 = vadd.xlane.f32.xlu1 %v846_v28 }
 0x15d   : > { %v845_v29 = vpop.xlane.xlu1 %844 }
 0x15e   : > { %v849_v30 = vmul.f32 %v845_v29, %v836_v18 }
 0x160   : > { %v851_v31 = vadd.f32 1e-05, %v849_v30 }
 0x162   : > { %2234 = vrsqrt.f32 %v851_v31  ;;  %vm859_vm3 = vweird.f32 %v851_v31 }
 0x165   : > { %v848_v32 = vpop.xlane.xlu1 %847 }
 0x166   : > { %v850_v33 = vmul.f32 %v848_v32, %v836_v18 }
 0x168   : > { %v2235_v34 = vpop.eup %2234  ;;  %v852_v35 = vadd.f32 1e-05, %v850_v33 }
 0x169   : > { %v854_v36 = vmul.f32 %v2235_v34, %v851_v31  ;;  %vm860_vm2 = vweird.f32 %v2235_v34 }
 0x16a   : > { %2236 = vrsqrt.f32 %v852_v35  ;;  %vm861_vm4 = vmor %vm859_vm3, %vm860_vm2  ;;  %vm869_vm6 = vweird.f32 %v852_v35 }
 0x16b   : > { %v855_v37 = vmul.f32 %v2235_v34, %v854_v36 }
 0x16d   : > { %v856_v38 = vmul.f32 0.5, %v855_v37 }
 0x16f   : > { %v857_v39 = vsub.f32 1.5, %v856_v38 }
 0x170   : > { %v2237_v40 = vpop.eup %2236 }
 0x171   : > { %v858_v41 = vmul.f32 %v2235_v34, %v857_v39  ;;  %v864_v42 = vmul.f32 %v2237_v40, %v852_v35  ;;  %vm870_vm5 = vweird.f32 %v2237_v40 }
 0x172   : > { %vm871_vm7 = vmor %vm869_vm6, %vm870_vm5 }
 0x173   : > { %v862_v44 = vsel %vm861_vm4, %v2235_v34, %v858_v41  ;;  %v865_v45 = vmul.f32 %v2237_v40, %v864_v42 }
 0x174   : > { %v873_v47 = vmul.f32 %v862_v44, %v839_v21 }
 0x175   : > { %v866_v48 = vmul.f32 0.5, %v865_v45 }
 0x176   : > { %v878_v49 = vmul.f32 %v2230_v43, %v873_v47 }
 0x177   : > { %v867_v50 = vsub.f32 1.5, %v866_v48 }
 0x178   : > { %v883_v51 = vadd.f32 %v2231_v46, %v878_v49 }
 0x179   : > { %v868_v52 = vmul.f32 %v2237_v40, %v867_v50 }
 0x17a   : > { %885 = vst.msk [vmem:[%s2720_s30] sm:$0xff] %vm823_vm0, %v883_v51 }
 0x17b   : > { %v872_v53 = vsel %vm871_vm7, %v2237_v40, %v868_v52 }
 0x17c   : > { %v874_v54 = vmul.f32 %v872_v53, %v840_v26 }
 0x17e   : > { %v879_v55 = vmul.f32 %v2230_v43, %v874_v54 }
 0x180   : > { %v884_v56 = vadd.f32 %v2231_v46, %v879_v55 }
 0x182   : > { %886 = vst.msk [vmem:[%s2720_s30 + $0x8] sm:$0xff] %vm823_vm0, %v884_v56 }
 0x183 PF: > { %p1959_p12 = scmp.ne.s32.totalorder %s2397_s23, 0 }
 0x184   : > { %s3065_s26 = scalar_lea.vmem (!%p1959_p12), %s2985_s3, %s2647_s7  ;;  %s3066_s14 = scalar_lea.vmem (!%p1959_p12), %s2986_s4, %s2647_s7 }
 0x185   : > { %889 = sbr.rel (%p1959_p12) target bundleno = 2428 (0x97c), region = 129  ;;  %s2427_s27 = smov (!%p1959_p12), 64  }
 0x186   : > { %s2429_s6 = smov (!%p1959_p12), 80   ;;  %s2430_s29 = smov (!%p1959_p12), 16  }
 0x187   : > { %s2431_s13 = smov (!%p1959_p12), 112   ;;  %s2432_s12 = smov (!%p1959_p12), 96  }
 0x188   : > { %s2433_s17 = smov (!%p1959_p12), 32   ;;  %s3067_s18 = sld [smem:[#allocation25_spill]] (!%p1959_p12) }
 0x189   : > { %s3068_s1 = sld [smem:[#allocation32_spill]] (!%p1959_p12) }
 0x18a   : > { %v2738_v57 = vld [vmem:[%s2720_s30] sm:$0xff]  ;;  %vm894_vm8 = vcmask 523264   ;;  %v2424_v59 = vmov 0.0   ;;  %v2745_v60 = vld [vmem:[%s2720_s30 + $0x8] sm:$0xff]  ;;  %v2425_v62 = vmov 64.0   ;;  %vm1055_vm0 = vcmask 130048  }
 0x18b   : > { %v895_v58 = vsel %vm894_vm8, %v2738_v57, 0.0  ;;  %1492 = vst.msk [vmem:[#allocation2] sm:$0xff] %vm894_vm8, %v2424_v59  ;;  %v898_v61 = vsel %vm894_vm8, %v2745_v60, 0.0  ;;  %2243 = vrcp.f32 %v2425_v62  ;;  %v1986_v15 = vld [vmem:[%s2668_s20 + $0x30] sm:$0xf]  ;;  %vm1122_vm2 = vcmask 125952  }
 0x18c   : > { %1493 = vst.msk [vmem:[#allocation2 + $0x8] sm:$0xff] %vm894_vm8, %v2424_v59  ;;  %896 = vadd.xlane.f32.xlu0 %v895_v58  ;;  %v2094_v16 = vld [vmem:[%s2668_s20 + $0x34] sm:$0xf0]  ;;  %v2093_v17 = vld [vmem:[%s2668_s20 + $0x34] sm:$0xf]  ;;  %vm1202_vm3 = vcmask 257152  }
 0x18d   : > { %v1987_v18 = vor.u32 %v2094_v16, %v1986_v15  ;;  %v1988_v19 = vld [vmem:[%s2668_s20 + $0x38] sm:$0xf0]  ;;  %v1978_v21 = vld [vmem:[%s2668_s20 + $0x20] sm:$0xf]  ;;  %v2092_v22 = vld [vmem:[%s2668_s20 + $0x24] sm:$0xf0] }
 0x18e   : > { %v1991_v20 = vor.u32 %v2093_v17, %v1988_v19  ;;  %v2091_v23 = vld [vmem:[%s2668_s20 + $0x24] sm:$0xf]  ;;  %v1979_v24 = vor.u32 %v2092_v22, %v1978_v21  ;;  %v1980_v25 = vld [vmem:[%s2668_s20 + $0x28] sm:$0xf0]  ;;  %v1970_v27 = vld [vmem:[%s2668_s20 + $0x10] sm:$0xf] }
 0x18f   : > { %1018 = vmatpush.bf16.msra.mxu0 %v1987_v18  ;;  %v1983_v26 = vor.u32 %v2091_v23, %v1980_v25  ;;  %v2090_v28 = vld [vmem:[%s2668_s20 + $0x14] sm:$0xf0]  ;;  %v2089_v29 = vld [vmem:[%s2668_s20 + $0x14] sm:$0xf]  ;;  %v1972_v31 = vld [vmem:[%s2668_s20 + $0x18] sm:$0xf0]  ;;  %s3069_s10 = scalar_lea.vmem %s3068_s1, %s2647_s7 }
 0x190   : > { %1032 = vmatpush.bf16.msra.mxu1 %v1991_v20  ;;  %v1971_v30 = vor.u32 %v2090_v28, %v1970_v27  ;;  %v1975_v32 = vor.u32 %v2089_v29, %v1972_v31  ;;  %v1962_v33 = vld [vmem:[%s2668_s20] sm:$0xf]  ;;  %v2088_v34 = vld [vmem:[%s2668_s20 + $0x4] sm:$0xf0]  ;;  %v2087_v35 = vld [vmem:[%s2668_s20 + $0x4] sm:$0xf] }
 0x191   : > { %v2244_v63 = vpop.eup %2243  ;;  %v1963_v37 = vor.u32 %v2088_v34, %v1962_v33  ;;  %v1964_v38 = vld [vmem:[%s2668_s20 + $0x8] sm:$0xf0]  ;;  %v2238_v59 = vld [vmem:[%s3065_s26] ss:$0 sm:$0xff]  ;;  %vm1282_vm4 = vcmask 388352   ;;  %vm1362_vm5 = vcmask 519552  }
 0x192   : > { %v902_v0 = vmul.f32 64.0, %v2244_v63  ;;  %vm906_vm9 = vweird.f32 %v2244_v63  ;;  %v1967_v40 = vor.u32 %v2087_v35, %v1964_v38  ;;  %s3071_s22 = sld [smem:[#allocation34_spill]] }
 0x193   : > { %1019 = vmatpush.bf16.msra.mxu0 %v1979_v24 }
 0x194   : > { %899 = vadd.xlane.f32.xlu0 %v898_v61  ;;  %v903_v1 = vsub.f32 1.0, %v902_v0  ;;  %1033 = vmatpush.bf16.msra.mxu1 %v1983_v26 }
 0x196   : > { %v904_v2 = vmul.f32 %v2244_v63, %v903_v1  ;;  %v2239_v1 = vld [vmem:[%s3066_s14] ss:$0 sm:$0xff] }
 0x197   : > { %1020 = vmatpush.bf16.msra.mxu0 %v1971_v30  ;;  %v1044_v30 = vlaneseq }
 0x198   : > { %v905_v3 = vadd.f32 %v2244_v63, %v904_v2  ;;  %1034 = vmatpush.bf16.msra.mxu1 %v1975_v32  ;;  %v2428_v32 = vmov -1e+30   ;;  %s3072_s0 = scalar_lea.vmem %s3071_s22, %s2647_s7 }
 0x199   : > { %v1045_v31 = vand.u32 127, %v1044_v30 }
 0x19a   : > { %v2749_v4 = vsel %vm906_vm9, %v2244_v63, %v905_v3 }
 0x19b   : > { %1021 = vmatpush.bf16.msra.mxu0 %v1963_v37  ;;  %vm1046_vm1 = vcmp.lt.s32.totalorder %v1045_v31, 12 }
 0x19c   : > { %1035 = vmatpush.bf16.msra.mxu1 %v1967_v40  ;;  %v2805_v33 = vsel %vm1046_vm1, 0.0, %v2428_v32 }
 0x1ff   : > { %v897_v5 = vpop.xlane.xlu0 %896 }
 0x200   : > { %v908_v6 = vmul.f32 %v2749_v4, %v897_v5 }
 0x202   : > { %v2753_v7 = vsub.f32 %v2738_v57, %v908_v6 }
 0x204   : > { %v912_v8 = vmul.f32 %v2753_v7, %v2753_v7 }
 0x206   : > { %v914_v9 = vsel %vm894_vm8, %v912_v8, 0.0 }
 0x207   : > { %915 = vadd.xlane.f32.xlu1 %v914_v9  ;;  %v900_v10 = vpop.xlane.xlu0 %899 }
 0x208   : > { %v909_v11 = vmul.f32 %v2749_v4, %v900_v10 }
 0x20a   : > { %v2760_v12 = vsub.f32 %v2745_v60, %v909_v11 }
 0x20c   : > { %v913_v13 = vmul.f32 %v2760_v12, %v2760_v12 }
 0x20e   : > { %v917_v14 = vsel %vm894_vm8, %v913_v13, 0.0 }
 0x20f   : > { %918 = vadd.xlane.f32.xlu1 %v917_v14 }
 0x27a   : > { %v916_v36 = vpop.xlane.xlu1 %915 }
 0x27b   : > { %v920_v39 = vmul.f32 %v916_v36, %v2749_v4 }
 0x27d   : > { %v922_v41 = vadd.f32 1e-05, %v920_v39 }
 0x27f   : > { %2245 = vrsqrt.f32 %v922_v41  ;;  %vm930_vm11 = vweird.f32 %v922_v41 }
 0x282   : > { %v919_v42 = vpop.xlane.xlu1 %918 }
 0x283   : > { %v921_v43 = vmul.f32 %v919_v42, %v2749_v4 }
 0x285   : > { %v2246_v44 = vpop.eup %2245  ;;  %v923_v45 = vadd.f32 1e-05, %v921_v43 }
 0x286   : > { %v925_v46 = vmul.f32 %v2246_v44, %v922_v41  ;;  %vm931_vm10 = vweird.f32 %v2246_v44 }
 0x287   : > { %2247 = vrsqrt.f32 %v923_v45  ;;  %vm932_vm12 = vmor %vm930_vm11, %vm931_vm10  ;;  %vm940_vm14 = vweird.f32 %v923_v45  ;;  %vm1489_vm10 = vcmask 519168  }
 0x288   : > { %v926_v47 = vmul.f32 %v2246_v44, %v925_v46 }
 0x28a   : > { %v927_v48 = vmul.f32 0.5, %v926_v47 }
 0x28c   : > { %v928_v49 = vsub.f32 1.5, %v927_v48 }
 0x28d   : > { %v2248_v50 = vpop.eup %2247 }
 0x28e   : > { %v929_v51 = vmul.f32 %v2246_v44, %v928_v49  ;;  %v935_v52 = vmul.f32 %v2248_v50, %v923_v45  ;;  %vm941_vm13 = vweird.f32 %v2248_v50 }
 0x28f   : > { %vm942_vm15 = vmor %vm940_vm14, %vm941_vm13 }
 0x290   : > { %v936_v53 = vmul.f32 %v2248_v50, %v935_v52  ;;  %v933_v54 = vsel %vm932_vm12, %v2246_v44, %v929_v51 }
 0x291   : > { %v944_v58 = vmul.f32 %v933_v54, %v2753_v7  ;;  %v965_v7 = vld [vmem:[%s2674_s21] sm:$0x3]  ;;  %s2426_s21 = smov 48  }
 0x292   : > { %v937_v55 = vmul.f32 0.5, %v936_v53  ;;  %v967_v10 = vperm.slane %v965_v7, 0  ;;  %v968_v11 = vperm.slane %v965_v7, 1 }
 0x293   : > { %v949_v0 = vmul.f32 %v2238_v59, %v944_v58 }
 0x294   : > { %v938_v56 = vsub.f32 1.5, %v937_v55 }
 0x295   : > { %v954_v3 = vadd.f32 %v2239_v1, %v949_v0 }
 0x296   : > { %v939_v61 = vmul.f32 %v2248_v50, %v938_v56 }
 0x298   : > { %v943_v62 = vsel %vm942_vm15, %v2248_v50, %v939_v61 }
 0x299   : > { %v945_v63 = vmul.f32 %v943_v62, %v2760_v12 }
 0x29b   : > { %v950_v2 = vmul.f32 %v2238_v59, %v945_v63 }
 0x29d   : > { %v955_v5 = vadd.f32 %v2239_v1, %v950_v2 }
 0x29f   : > { %v956_v6 = vpack.c.bf16 %v955_v5, %v954_v3 }
 0x2a1   : > { %1992 = vmatmul.msk.bf16.vlgmr.msra.gmra.mxu0 %vm894_vm8, %v956_v6  ;;  %1993 = vmatmul.msk.bf16.vlgmr.msra.gmra.mxu1 %vm894_vm8, %v956_v6 }
 0x31e   : > { %v1023_v8 = vpop.f32.mrf.mxu0  ;;  %v1037_v9 = vpop.f32.mrf.mxu1 }
 0x31f   : > { %v1024_v12 = vadd.f32 %v1023_v8, %v967_v10  ;;  %v1038_v13 = vadd.f32 %v1037_v9, %v968_v11 }
 0x321   : > { %v1042_v16 = vpack.c.bf16 %v1038_v13, %v1024_v12 }
 0x323   : > { %v1050_v20 = vunpack.c.l.b16 %v1042_v16  ;;  %v1099_v21 = vunpack.c.h.b16 %v1042_v16 }
 0x326   : > { %v1025_v14 = vpop.f32.mrf.mxu0  ;;  %v1039_v15 = vpop.f32.mrf.mxu1 }
 0x327   : > { %v1026_v17 = vadd.f32 %v1025_v14, %v967_v10  ;;  %v1040_v18 = vadd.f32 %v1039_v15, %v968_v11 }
 0x329   : > { %v1043_v19 = vpack.c.bf16 %v1040_v18, %v1026_v17 }
 0x32b   : > { %v1051_v22 = vunpack.c.l.b16 %v1043_v19  ;;  %v1100_v23 = vunpack.c.h.b16 %v1043_v19 }
 0x32d   : > { %v1052_v24 = vpack.c.b16 %v1051_v22, %v1050_v20  ;;  %v2798_v25 = vpack.c.b16 %v1100_v23, %v1099_v21 }
 0x32f   : > { %1113 = vmatpush.bf16.msra.mxu3 %v2798_v25  ;;  %1127 = vrot.lane.b32.xlu1 %v1052_v24, %s2426_s21 }
 0x330   : > { %1053 = vrot.lane.b32.xlu2 %v1052_v24, %s2427_s27 }
 0x38a   : > { %v1054_v26 = vpop.permute.xlu2 %1053 }
 0x38b   : > { %v1060_v27 = vsel %vm1055_vm0, %v1054_v26, 0 }
 0x38c   : > { %1069 = vmatpush.bf16.xpose.msra.mxu2 %v1060_v27 }
 0x393   : > { %1994 = vmatmul.msk.bf16.vlgmr.msra.gmra.mxu2 %vm1055_vm0, %v1052_v24 }
 0x3a1   : > { %v1128_v28 = vpop.permute.xlu1 %1127 }
 0x3a2   : > { %v1133_v29 = vsel %vm1055_vm0, %v1128_v28, 0 }
 0x3a3   : > { %1142 = vmatpush.bf16.xpose.msrb.mxu3 %v1133_v29 }
 0x416   : > { %v1071_v34 = vpop.f32.mrf.mxu2 }
 0x417   : > { %v1072_v35 = vadd.f32 %v1071_v34, %v2805_v33 }
 0x419   : > { %v1076_v36 = vsel %vm1055_vm0, %v1072_v35, -inf }
 0x41a   : > { %1077 = vmax.xlane.f32.xlu2 %v1076_v36 }
 0x41e   : > { %v1073_v37 = vpop.f32.mrf.mxu2 }
 0x41f   : > { %v1074_v38 = vadd.f32 %v1073_v37, %v2805_v33 }
 0x421   : > { %v1079_v39 = vsel %vm1055_vm0, %v1074_v38, -inf }
 0x422   : > { %1080 = vmax.xlane.f32.xlu0 %v1079_v39 }
 0x432   : > { %1285 = vrot.lane.b32.xlu2 %v1052_v24, %s2429_s6 }
 0x48d   : > { %v1078_v40 = vpop.xlane.xlu2 %1077 }
 0x48e   : > { %v1082_v41 = vsub.f32 %v1072_v35, %v1078_v40 }
 0x490   : > { %v1084_v42 = vmul.f32 1.442695, %v1082_v41 }
 0x492   : > { %2249 = vpow2.f32 %v1084_v42 }
 0x495   : > { %v1081_v43 = vpop.xlane.xlu0 %1080  ;;  %v1286_v1 = vpop.permute.xlu2 %1285 }
 0x496   : > { %v1083_v44 = vsub.f32 %v1074_v38, %v1081_v43 }
 0x498   : > { %v2250_v45 = vpop.eup %2249  ;;  %v1086_v46 = vmul.f32 1.442695, %v1083_v44 }
 0x499   : > { %v1088_v47 = vsel %vm1055_vm0, %v2250_v45, 0.0 }
 0x49a   : > { %2251 = vpow2.f32 %v1086_v46  ;;  %1089 = vadd.xlane.f32.xlu1 %v1088_v47 }
 0x4a0   : > { %v2252_v48 = vpop.eup %2251 }
 0x4a1   : > { %v1091_v49 = vsel %vm1055_vm0, %v2252_v48, 0.0 }
 0x4a2   : > { %1092 = vadd.xlane.f32.xlu0 %v1091_v49 }
 0x4b3   : > { %1287 = vrot.lane.b32.xlu1 %v1052_v24, %s2430_s29 }
 0x4b6   : > { %1125 = vrot.lane.b32.xlu0 %v1052_v24, %s2431_s13 }
 0x4bb   : > { %1205 = vrot.lane.b32.xlu1 %v1052_v24, %s2432_s12 }
 0x4be   : > { %1207 = vrot.lane.b32.xlu0 %v1052_v24, %s2433_s17 }
 0x50d   : > { %v1090_v50 = vpop.xlane.xlu1 %1089 }
 0x50e   : > { %2253 = vrcp.f32 %v1090_v50 }
 0x514   : > { %v2254_v52 = vpop.eup %2253 }
 0x515   : > { %v1093_v51 = vpop.xlane.xlu0 %1092  ;;  %v1096_v54 = vmul.f32 %v2254_v52, %v2250_v45 }
 0x516   : > { %2255 = vrcp.f32 %v1093_v51 }
 0x51c   : > { %v2256_v53 = vpop.eup %2255 }
 0x51d   : > { %v1097_v55 = vmul.f32 %v2256_v53, %v2252_v48 }
 0x51f   : > { %v1098_v56 = vpack.c.bf16 %v1097_v55, %v1096_v54 }
 0x521   : > { %1995 = vmatmul.msk.bf16.vlgmr.msra.gmra.mxu3 %vm1055_vm0, %v1098_v56 }
 0x525   : > { %v1288_v58 = vpop.permute.xlu1 %1287 }
 0x526   : > { %v1293_v59 = vsel %vm1055_vm0, %v1288_v58, 0 }
 0x527   : > { %1302 = vmatpush.bf16.xpose.msra.mxu3 %v1293_v59 }
 0x528   : > { %v1126_v61 = vpop.permute.xlu0 %1125 }
 0x52d   : > { %v1206_v0 = vpop.permute.xlu1 %1205 }
 0x530   : > { %v1208_v62 = vpop.permute.xlu0 %1207 }
 0x531   : > { %1996 = vmatmul.msk.bf16.vlgmr.msrb.gmra.mxu3 %vm1055_vm0, %v1126_v61  ;;  %v1213_v63 = vsel %vm1055_vm0, %v1208_v62, 0 }
 0x532   : > { %1222 = vmatpush.bf16.xpose.msrb.mxu0 %v1213_v63 }
 0x539   : > { %1998 = vmatmul.msk.bf16.vlgmr.msrb.gmra.mxu0 %vm1055_vm0, %v1206_v0 }
 0x541   : > { %2000 = vmatmul.msk.bf16.vlgmr.msra.gmra.mxu3 %vm1055_vm0, %v1286_v1 }
 0x5a4   : > { %v1115_v2 = vpop.f32.mrf.mxu3 }
 0x5a5   : > { %v1120_v3 = vpack.c.bf16 %v1115_v2, %v1115_v2 }
 0x5a7   : > { %1123 = vst.msk [vmem:[#allocation4] sm:$0xf] %vm1122_vm2, %v1120_v3 }
 0x5ac   : > { %v1117_v5 = vpop.f32.mrf.mxu3 }
 0x5ad   : > { %v1121_v6 = vpack.c.bf16 %v1117_v5, %v1117_v5 }
 0x5af   : > { %1124 = vst.msk [vmem:[#allocation4 + $0x4] sm:$0xf] %vm1122_vm2, %v1121_v6 }
 0x5b4   : > { %v1144_v7 = vpop.f32.mrf.mxu3 }
 0x5b5   : > { %v1145_v8 = vadd.f32 %v1144_v7, %v2805_v33 }
 0x5b6   : > { %v1224_v13 = vpop.f32.mrf.mxu0 }
 0x5b7   : > { %v1149_v9 = vsel %vm1055_vm0, %v1145_v8, -inf  ;;  %v1225_v14 = vadd.f32 %v1224_v13, %v2805_v33 }
 0x5b8   : > { %1150 = vmax.xlane.f32.xlu0 %v1149_v9 }
 0x5b9   : > { %v1229_v17 = vsel %vm1055_vm0, %v1225_v14, -inf }
 0x5bc   : > { %v1146_v10 = vpop.f32.mrf.mxu3 }
 0x5bd   : > { %v1147_v11 = vadd.f32 %v1146_v10, %v2805_v33 }
 0x5be   : > { %v1226_v22 = vpop.f32.mrf.mxu0 }
 0x5bf   : > { %v1152_v12 = vsel %vm1055_vm0, %v1147_v11, -inf  ;;  %v1227_v23 = vadd.f32 %v1226_v22, %v2805_v33 }
 0x5c0   : > { %1153 = vmax.xlane.f32.xlu1 %v1152_v12 }
 0x5c1   : > { %v1232_v24 = vsel %vm1055_vm0, %v1227_v23, -inf }
 0x5c4   : > { %v1304_v15 = vpop.f32.mrf.mxu3 }
 0x5c5   : > { %v1305_v16 = vadd.f32 %v1304_v15, %v2805_v33 }
 0x5c7   : > { %v1309_v18 = vsel %vm1055_vm0, %v1305_v16, -inf }
 0x5c8   : > { %1230 = vmax.xlane.f32.xlu1 %v1229_v17  ;;  %1310 = vmax.xlane.f32.xlu2 %v1309_v18 }
 0x5cc   : > { %v1306_v19 = vpop.f32.mrf.mxu3 }
 0x5cd   : > { %v1307_v20 = vadd.f32 %v1306_v19, %v2805_v33 }
 0x5cf   : > { %v1312_v21 = vsel %vm1055_vm0, %v1307_v20, -inf }
 0x5d0   : > { %1313 = vmax.xlane.f32.xlu0 %v1312_v21 }
 0x5d8   : > { %1233 = vmax.xlane.f32.xlu0 %v1232_v24 }
 0x5ec   : > { %1172 = vrot.lane.b32.xlu0 %v2798_v25, %s2431_s13 }
 0x5f4   : > { %1332 = vrot.lane.b32.xlu0 %v2798_v25, %s2429_s6 }
 0x62b   : > { %v1151_v26 = vpop.xlane.xlu0 %1150 }
 0x62c   : > { %v1155_v27 = vsub.f32 %v1145_v8, %v1151_v26 }
 0x62e   : > { %v1157_v28 = vmul.f32 1.442695, %v1155_v27 }
 0x630   : > { %2257 = vpow2.f32 %v1157_v28 }
 0x633   : > { %v1154_v29 = vpop.xlane.xlu1 %1153 }
 0x634   : > { %v1156_v30 = vsub.f32 %v1147_v11, %v1154_v29 }
 0x636   : > { %v2258_v31 = vpop.eup %2257  ;;  %v1159_v32 = vmul.f32 1.442695, %v1156_v30 }
 0x637   : > { %v1161_v34 = vsel %vm1055_vm0, %v2258_v31, 0.0 }
 0x638   : > { %2259 = vpow2.f32 %v1159_v32  ;;  %1162 = vadd.xlane.f32.xlu2 %v1161_v34  ;;  %v2098_v34 = vld [vmem:[%s3067_s18 + $0x10] sm:$0xff] }
 0x63b   : > { %v1231_v33 = vpop.xlane.xlu1 %1230  ;;  %v1311_v35 = vpop.xlane.xlu2 %1310 }
 0x63c   : > { %v1235_v36 = vsub.f32 %v1225_v14, %v1231_v33  ;;  %v1315_v39 = vsub.f32 %v1305_v16, %v1311_v35  ;;  %v2097_v33 = vld [vmem:[%s3067_s18 + $0x8] sm:$0xff]  ;;  %v2096_v35 = vld [vmem:[%s3067_s18] sm:$0xff] }
 0x63e   : > { %v2260_v37 = vpop.eup %2259  ;;  %v1237_v38 = vmul.f32 1.442695, %v1235_v36  ;;  %v1317_v41 = vmul.f32 1.442695, %v1315_v39 }
 0x63f   : > { %v1164_v40 = vsel %vm1055_vm0, %v2260_v37, 0.0 }
 0x640   : > { %2261 = vpow2.f32 %v1237_v38  ;;  %1165 = vadd.xlane.f32.xlu1 %v1164_v40 }
 0x641   : > { %2263 = vpow2.f32 %v1317_v41 }
 0x643   : > { %v1314_v42 = vpop.xlane.xlu0 %1313 }
 0x644   : > { %v1316_v43 = vsub.f32 %v1307_v20, %v1314_v42  ;;  %v2240_v42 = vld [vmem:[%s3069_s10] ss:$0 sm:$0xff] }
 0x646   : > { %v2262_v44 = vpop.eup %2261  ;;  %v1319_v45 = vmul.f32 1.442695, %v1316_v43 }
 0x647   : > { %v1241_v46 = vsel %vm1055_vm0, %v2262_v44, 0.0  ;;  %v2264_v48 = vpop.eup %2263 }
 0x648   : > { %2265 = vpow2.f32 %v1319_v45  ;;  %1242 = vadd.xlane.f32.xlu2 %v1241_v46  ;;  %v1321_v53 = vsel %vm1055_vm0, %v2264_v48, 0.0 }
 0x64b   : > { %v1234_v47 = vpop.xlane.xlu0 %1233 }
 0x64c   : > { %v1236_v49 = vsub.f32 %v1227_v23, %v1234_v47 }
 0x64e   : > { %v2266_v50 = vpop.eup %2265  ;;  %v1239_v51 = vmul.f32 1.442695, %v1236_v49 }
 0x64f   : > { %v1324_v52 = vsel %vm1055_vm0, %v2266_v50, 0.0 }
 0x650   : > { %2267 = vpow2.f32 %v1239_v51  ;;  %1325 = vadd.xlane.f32.xlu1 %v1324_v52  ;;  %1322 = vadd.xlane.f32.xlu2 %v1321_v53 }
 0x656   : > { %v2268_v54 = vpop.eup %2267 }
 0x657   : > { %v1244_v55 = vsel %vm1055_vm0, %v2268_v54, 0.0 }
 0x658   : > { %1245 = vadd.xlane.f32.xlu1 %v1244_v55 }
 0x65e   : > { %v1173_v56 = vpop.permute.xlu0 %1172 }
 0x65f   : > { %1185 = vmatpush.bf16.msrb.mxu2 %v1173_v56 }
 0x666   : > { %v1333_v58 = vpop.permute.xlu0 %1332 }
 0x667   : > { %1345 = vmatpush.bf16.msra.mxu2 %v1333_v58 }
 0x668   : > { %1252 = vrot.lane.b32.xlu2 %v2798_v25, %s2432_s12 }
 0x6ab   : > { %v1163_v59 = vpop.xlane.xlu2 %1162 }
 0x6ac   : > { %2269 = vrcp.f32 %v1163_v59 }
 0x6b2   : > { %v2270_v62 = vpop.eup %2269 }
 0x6b3   : > { %v1166_v61 = vpop.xlane.xlu1 %1165  ;;  %v1169_v0 = vmul.f32 %v2270_v62, %v2258_v31  ;;  %v2099_v31 = vld [vmem:[%s3067_s18 + $0x18] sm:$0xff] }
 0x6b4   : > { %2271 = vrcp.f32 %v1166_v61  ;;  %1411 = vmatpush.bf16.msra.mxu0 %v2099_v31 }
 0x6b8   : > { %1412 = vmatpush.bf16.msra.mxu0 %v2098_v34 }
 0x6ba   : > { %v2272_v63 = vpop.eup %2271 }
 0x6bb   : > { %v1170_v1 = vmul.f32 %v2272_v63, %v2260_v37  ;;  %v1243_v2 = vpop.xlane.xlu2 %1242 }
 0x6bc   : > { %1413 = vmatpush.bf16.msra.mxu0 %v2097_v33 }
 0x6bd   : > { %v1171_v3 = vpack.c.bf16 %v1170_v1, %v1169_v0 }
 0x6bf   : > { %1997 = vmatmul.msk.bf16.vlgmr.msrb.gmra.mxu2 %vm1055_vm0, %v1171_v3 }
 0x6c0   : > { %1414 = vmatpush.bf16.msra.mxu0 %v2096_v35 }
 0x6c3   : > { %v1326_v5 = vpop.xlane.xlu1 %1325  ;;  %v1323_v6 = vpop.xlane.xlu2 %1322 }
 0x6c4   : > { %2273 = vrcp.f32 %v1326_v5 }
 0x6c5   : > { %2275 = vrcp.f32 %v1323_v6 }
 0x6c6   : > { %2277 = vrcp.f32 %v1243_v2 }
 0x6ca   : > { %v2274_v7 = vpop.eup %2273 }
 0x6cb   : > { %v2276_v8 = vpop.eup %2275  ;;  %v1330_v25 = vmul.f32 %v2274_v7, %v2266_v50  ;;  %v1246_v9 = vpop.xlane.xlu1 %1245 }
 0x6cc   : > { %v1253_v10 = vpop.permute.xlu2 %1252  ;;  %v1329_v11 = vmul.f32 %v2276_v8, %v2264_v48  ;;  %2279 = vrcp.f32 %v1246_v9  ;;  %v2278_v13 = vpop.eup %2277 }
 0x6cd   : > { %1265 = vmatpush.bf16.msrb.mxu1 %v1253_v10  ;;  %v1249_v15 = vmul.f32 %v2278_v13, %v2262_v44  ;;  %v2242_v13 = vld [vmem:[%s3072_s0] ss:$0 sm:$0xff] }
 0x6ce   : > { %v1331_v12 = vpack.c.bf16 %v1330_v25, %v1329_v11  ;;  %v2241_v11 = vld [vmem:[%s788_s9] ss:$0 sm:$0xff] }
 0x6d0   : > { %2001 = vmatmul.msk.bf16.vlgmr.msra.gmra.mxu2 %vm1055_vm0, %v1331_v12 }
 0x6d2   : > { %v2280_v14 = vpop.eup %2279 }
 0x6d3   : > { %v1250_v16 = vmul.f32 %v2280_v14, %v2268_v54 }
 0x6d5   : > { %v1251_v17 = vpack.c.bf16 %v1250_v16, %v1249_v15 }
 0x6d7   : > { %1999 = vmatmul.msk.bf16.vlgmr.msrb.gmra.mxu1 %vm1055_vm0, %v1251_v17 }
 0x742   : > { %v1187_v18 = vpop.f32.mrf.mxu2 }
 0x743   : > { %v1192_v19 = vpack.c.bf16 %v1187_v18, %v1187_v18 }
 0x745   : > { %1196 = vrot.lane.b32.xlu1 %v1192_v19, %s2430_s29 }
 0x74a   : > { %v1189_v20 = vpop.f32.mrf.mxu2 }
 0x74b   : > { %v1193_v28 = vpack.c.bf16 %v1189_v20, %v1189_v20 }
 0x753   : > { %v1347_v21 = vpop.f32.mrf.mxu2 }
 0x754   : > { %v1352_v22 = vpack.c.bf16 %v1347_v21, %v1347_v21  ;;  %v1267_v23 = vpop.f32.mrf.mxu1 }
 0x755   : > { %v1272_v24 = vpack.c.bf16 %v1267_v23, %v1267_v23 }
 0x756   : > { %1356 = vrot.lane.b32.xlu2 %v1352_v22, %s2426_s21 }
 0x757   : > { %1276 = vrot.lane.b32.xlu0 %v1272_v24, %s2433_s17 }
 0x75b   : > { %v1349_v26 = vpop.f32.mrf.mxu2 }
 0x75c   : > { %v1353_v27 = vpack.c.bf16 %v1349_v26, %v1349_v26  ;;  %v1269_v29 = vpop.f32.mrf.mxu1 }
 0x75d   : > { %v1273_v30 = vpack.c.bf16 %v1269_v29, %v1269_v29 }
 0x75e   : > { %1358 = vrot.lane.b32.xlu1 %v1353_v27, %s2426_s21 }
 0x75f   : > { %1198 = vrot.lane.b32.xlu0 %v1193_v28, %s2430_s29 }
 0x767   : > { %1278 = vrot.lane.b32.xlu0 %v1273_v30, %s2433_s17 }
 0x7b0   : > { %v1357_v37 = vpop.permute.xlu2 %1356 }
 0x7b7   : > { %v1197_v32 = vpop.permute.xlu1 %1196 }
 0x7b8   : > { %1203 = vst.msk [vmem:[#allocation4] sm:$0xf] %vm1202_vm3, %v1197_v32 }
 0x7c9   : > { %v1277_v36 = vpop.permute.xlu0 %1276 }
 0x7ca   : > { %1283 = vst.msk [vmem:[#allocation4] sm:$0xf] %vm1282_vm4, %v1277_v36 }
 0x7cb   : > { %1363 = vst.msk [vmem:[#allocation4] sm:$0xf] %vm1362_vm5, %v1357_v37 }
 0x7d0   : > { %v1359_v40 = vpop.permute.xlu1 %1358 }
 0x7d1   : > { %v1199_v38 = vpop.permute.xlu0 %1198 }
 0x7d2   : > { %1204 = vst.msk [vmem:[#allocation4 + $0x4] sm:$0xf] %vm1202_vm3, %v1199_v38 }
 0x7d9   : > { %v1279_v39 = vpop.permute.xlu0 %1278 }
 0x7da   : > { %1284 = vst.msk [vmem:[#allocation4 + $0x4] sm:$0xf] %vm1282_vm4, %v1279_v39 }
 0x7db   : > { %1364 = vst.msk [vmem:[#allocation4 + $0x4] sm:$0xf] %vm1362_vm5, %v1359_v40 }
 0x7e2   : > { %v2095_v41 = vld [vmem:[#allocation4] sm:$0xff] }
 0x7e3   : > { %2022 = vmatmul.msk.bf16.vlgmr.msra.gmra.mxu0 %vm894_vm8, %v2095_v41 }
 0x860   : > { %v1416_v43 = vpop.f32.mrf.mxu0 }
 0x861   : > { %v1421_v44 = vadd.f32 %v1416_v43, %v2738_v57 }
 0x863   : > { %v1427_v45 = vadd.f32 %v2240_v42, %v1421_v44 }
 0x865   : > { %1429 = vst.msk [vmem:[%s2720_s30] sm:$0xff] %vm894_vm8, %v1427_v45  ;;  %v1433_v46 = vsel %vm894_vm8, %v1427_v45, 0.0 }
 0x866   : > { %1434 = vadd.xlane.f32.xlu0 %v1433_v46 }
 0x868   : > { %v1418_v47 = vpop.f32.mrf.mxu0 }
 0x869   : > { %v1422_v48 = vadd.f32 %v1418_v47, %v2745_v60 }
 0x86b   : > { %v1428_v49 = vadd.f32 %v2240_v42, %v1422_v48 }
 0x86d   : > { %1430 = vst.msk [vmem:[%s2720_s30 + $0x8] sm:$0xff] %vm894_vm8, %v1428_v49  ;;  %v1436_v50 = vsel %vm894_vm8, %v1428_v49, 0.0 }
 0x86e   : > { %1437 = vadd.xlane.f32.xlu2 %v1436_v50 }
 0x8d9   : > { %v1435_v51 = vpop.xlane.xlu0 %1434 }
 0x8da   : > { %v1439_v52 = vmul.f32 %v1435_v51, %v2749_v4 }
 0x8dc   : > { %v1441_v53 = vsub.f32 %v1427_v45, %v1439_v52 }
 0x8de   : > { %v1443_v57 = vmul.f32 %v1441_v53, %v1441_v53 }
 0x8e0   : > { %v1445_v54 = vsel %vm894_vm8, %v1443_v57, 0.0 }
 0x8e1   : > { %1446 = vadd.xlane.f32.xlu1 %v1445_v54  ;;  %v1438_v55 = vpop.xlane.xlu2 %1437 }
 0x8e2   : > { %v1440_v56 = vmul.f32 %v1438_v55, %v2749_v4 }
 0x8e4   : > { %v1442_v58 = vsub.f32 %v1428_v49, %v1440_v56 }
 0x8e6   : > { %v1444_v59 = vmul.f32 %v1442_v58, %v1442_v58 }
 0x8e8   : > { %v1448_v60 = vsel %vm894_vm8, %v1444_v59, 0.0 }
 0x8e9   : > { %1449 = vadd.xlane.f32.xlu2 %v1448_v60 }
 0x954   : > { %v1447_v61 = vpop.xlane.xlu1 %1446 }
 0x955   : > { %v1451_v62 = vmul.f32 %v1447_v61, %v2749_v4 }
 0x957   : > { %v1453_v63 = vadd.f32 1e-05, %v1451_v62 }
 0x959   : > { %2281 = vrsqrt.f32 %v1453_v63  ;;  %vm1461_vm7 = vweird.f32 %v1453_v63 }
 0x95c   : > { %v1450_v0 = vpop.xlane.xlu2 %1449 }
 0x95d   : > { %v1452_v1 = vmul.f32 %v1450_v0, %v2749_v4 }
 0x95f   : > { %v2282_v2 = vpop.eup %2281  ;;  %v1454_v3 = vadd.f32 1e-05, %v1452_v1 }
 0x960   : > { %v1456_v5 = vmul.f32 %v2282_v2, %v1453_v63  ;;  %vm1462_vm6 = vweird.f32 %v2282_v2 }
 0x961   : > { %2283 = vrsqrt.f32 %v1454_v3  ;;  %vm1463_vm8 = vmor %vm1461_vm7, %vm1462_vm6  ;;  %vm1471_vm11 = vweird.f32 %v1454_v3 }
 0x962   : > { %v1457_v6 = vmul.f32 %v2282_v2, %v1456_v5 }
 0x964   : > { %v1458_v7 = vmul.f32 0.5, %v1457_v6 }
 0x966   : > { %v1459_v8 = vsub.f32 1.5, %v1458_v7 }
 0x967   : > { %v2284_v25 = vpop.eup %2283 }
 0x968   : > { %v1460_v9 = vmul.f32 %v2282_v2, %v1459_v8  ;;  %v1466_v10 = vmul.f32 %v2284_v25, %v1454_v3  ;;  %vm1472_vm9 = vweird.f32 %v2284_v25 }
 0x969   : > { %vm1473_vm12 = vmor %vm1471_vm11, %vm1472_vm9 }
 0x96a   : > { %v1464_v4 = vsel %vm1463_vm8, %v2282_v2, %v1460_v9  ;;  %v1467_v12 = vmul.f32 %v2284_v25, %v1466_v10 }
 0x96b   : > { %v1475_v14 = vmul.f32 %v1464_v4, %v1441_v53 }
 0x96c   : > { %v1468_v15 = vmul.f32 0.5, %v1467_v12 }
 0x96d   : > { %v1480_v16 = vmul.f32 %v2241_v11, %v1475_v14 }
 0x96e   : > { %v1469_v17 = vsub.f32 1.5, %v1468_v15 }
 0x96f   : > { %v1485_v18 = vadd.f32 %v2242_v13, %v1480_v16 }
 0x970   : > { %v1470_v19 = vmul.f32 %v2284_v25, %v1469_v17 }
 0x971   : > { %v1487_v20 = vpack.c.bf16 %v1485_v18, %v1485_v18 }
 0x972   : > { %v1474_v21 = vsel %vm1473_vm12, %v2284_v25, %v1470_v19 }
 0x973   : > { %1490 = vst.msk [vmem:[#allocation3] sm:$0xf] %vm1489_vm10, %v1487_v20  ;;  %v1476_v22 = vmul.f32 %v1474_v21, %v1442_v58 }
 0x975   : > { %v1481_v23 = vmul.f32 %v2241_v11, %v1476_v22 }
 0x977   : > { %v1486_v24 = vadd.f32 %v2242_v13, %v1481_v23 }
 0x979   : > { %v1488_v26 = vpack.c.bf16 %v1486_v24, %v1486_v24 }
 0x97b   : > { %1491 = vst.msk [vmem:[#allocation3 + $0x4] sm:$0xf] %vm1489_vm10, %v1488_v26 }
 0x97c PF: > { %v2104_v27 = vld [vmem:[%s2717_s25 + $0x18] sm:$0xff]  ;;  %v2103_v28 = vld [vmem:[%s2717_s25 + $0x10] sm:$0xff]  ;;  %v2102_v29 = vld [vmem:[%s2717_s25 + $0x8] sm:$0xff]  ;;  %vm1537_vm13 = vcmask 523264   ;;  %p2078_p0 = scmp.ne.s32.totalorder %s2397_s23, 1 }
 0x97d   : > { %1545 = vmatpush.bf16.msra.mxu0 %v2104_v27  ;;  %v2101_v30 = vld [vmem:[%s2717_s25] sm:$0xff]  ;;  %v2112_v32 = vld [vmem:[%s2713_s19 + $0x38] sm:$0xff]  ;;  %v2111_v34 = vld [vmem:[%s2713_s19 + $0x30] sm:$0xff] }
 0x97e   : > { %1664 = vmatpush.bf16.msra.mxu1 %v2112_v32  ;;  %v2110_v33 = vld [vmem:[%s2713_s19 + $0x28] sm:$0xff]  ;;  %v2109_v35 = vld [vmem:[%s2713_s19 + $0x20] sm:$0xff]  ;;  %v2108_v36 = vld [vmem:[%s2713_s19 + $0x18] sm:$0xff] }
 0x97f   : > { %v2285_v37 = vld [vmem:[%s798_s5] ss:$0 sm:$0xff]  ;;  %v2107_v39 = vld [vmem:[%s2713_s19 + $0x10] sm:$0xff]  ;;  %v2106_v42 = vld [vmem:[%s2713_s19 + $0x8] sm:$0xff] }
 0x980   : > { %v2105_v45 = vld [vmem:[%s2713_s19] sm:$0xff]  ;;  %v1598_v14 = vld [vmem:[#allocation2 + $0x8] sm:$0xff] }
 0x981   : > { %1546 = vmatpush.bf16.msra.mxu0 %v2103_v28  ;;  %v1597_v4 = vld [vmem:[#allocation2] sm:$0xff] }
 0x982   : > { %v2100_v31 = vld [vmem:[#allocation3] sm:$0xff]  ;;  %1665 = vmatpush.bf16.msra.mxu1 %v2111_v34 }
 0x985   : > { %1547 = vmatpush.bf16.msra.mxu0 %v2102_v29 }
 0x986   : > { %1666 = vmatpush.bf16.msra.mxu1 %v2110_v33 }
 0x989   : > { %1548 = vmatpush.bf16.msra.mxu0 %v2101_v30 }
 0x98a   : > { %1667 = vmatpush.bf16.msra.mxu1 %v2109_v35 }
 0x98c   : > { %2043 = vmatmul.msk.bf16.vlgmr.msra.gmra.mxu0 %vm1537_vm13, %v2100_v31 }
 0x98e   : > { %1668 = vmatpush.bf16.msra.mxu1 %v2108_v36 }
 0x992   : > { %1669 = vmatpush.bf16.msra.mxu1 %v2107_v39 }
 0x996   : > { %1670 = vmatpush.bf16.msra.mxu1 %v2106_v42 }
 0x99a   : > { %1671 = vmatpush.bf16.msra.mxu1 %v2105_v45 }
 0xa09   : > { %v1550_v38 = vpop.f32.mrf.mxu0 }
 0xa0a   : > { %v1551_v40 = vadd.f32 %v2285_v37, %v1550_v38 }
 0xa0c   : > { %v2044_v41 = vmul.f32 -1.702, %v1551_v40 }
 0xa0e   : > { %v1559_v43 = vmul.f32 1.442695, %v2044_v41 }
 0xa10   : > { %2286 = vpow2.f32 %v1559_v43 }
 0xa11   : > { %v1552_v44 = vpop.f32.mrf.mxu0 }
 0xa12   : > { %v1553_v46 = vadd.f32 %v2285_v37, %v1552_v44 }
 0xa14   : > { %v2045_v47 = vmul.f32 -1.702, %v1553_v46 }
 0xa16   : > { %v2287_v48 = vpop.eup %2286  ;;  %v1561_v49 = vmul.f32 1.442695, %v2045_v47 }
 0xa17   : > { %v1563_v50 = vadd.f32 1.0, %v2287_v48 }
 0xa18   : > { %2288 = vpow2.f32 %v1561_v49 }
 0xa19   : > { %2290 = vrcp.f32 %v1563_v50  ;;  %v1576_v60 = vand.u32 2147483648, %v1563_v50  ;;  %vm1570_vm15 = vweird.f32 %v1563_v50  ;;  %v1574_v61 = vand.u32 2147483647, %v1563_v50 }
 0xa1b   : > { %v1577_v3 = vor.u32 1.1754944e-38, %v1576_v60  ;;  %vm1575_vm2 = vcmp.eq.f32.partialorder %v1574_v61, 8.507059e+37 }
 0xa1e   : > { %v2289_v51 = vpop.eup %2288 }
 0xa1f   : > { %v2291_v52 = vpop.eup %2290  ;;  %v1564_v53 = vadd.f32 1.0, %v2289_v51 }
 0xa20   : > { %v1566_v57 = vmul.f32 %v2291_v52, %v1563_v50  ;;  %vm1571_vm14 = vweird.f32 %v2291_v52 }
 0xa21   : > { %2292 = vrcp.f32 %v1564_v53  ;;  %vm1572_vm0 = vmor %vm1570_vm15, %vm1571_vm14  ;;  %v1591_v63 = vand.u32 2147483648, %v1564_v53  ;;  %v1589_v2 = vand.u32 2147483647, %v1564_v53  ;;  %vm1585_vm3 = vweird.f32 %v1564_v53 }
 0xa22   : > { %v1567_v54 = vsub.f32 1.0, %v1566_v57 }
 0xa23   : > { %v1592_v7 = vor.u32 1.1754944e-38, %v1591_v63  ;;  %vm1590_vm5 = vcmp.eq.f32.partialorder %v1589_v2, 8.507059e+37 }
 0xa24   : > { %v1568_v55 = vmul.f32 %v2291_v52, %v1567_v54 }
 0xa26   : > { %v1569_v58 = vadd.f32 %v2291_v52, %v1568_v55 }
 0xa27   : > { %v2293_v56 = vpop.eup %2292 }
 0xa28   : > { %v1581_v59 = vmul.f32 %v2293_v56, %v1564_v53  ;;  %v1573_v0 = vsel %vm1572_vm0, %v2291_v52, %v1569_v58  ;;  %vm1586_vm1 = vweird.f32 %v2293_v56 }
 0xa29   : > { %v1578_v6 = vsel %vm1575_vm2, %v1577_v3, %v1573_v0  ;;  %vm1587_vm4 = vmor %vm1585_vm3, %vm1586_vm1 }
 0xa2a   : > { %v1582_v62 = vsub.f32 1.0, %v1581_v59  ;;  %v1595_v9 = vmul.f32 %v1578_v6, %v1551_v40 }
 0xa2c   : > { %v1583_v1 = vmul.f32 %v2293_v56, %v1582_v62 }
 0xa2e   : > { %v1584_v5 = vadd.f32 %v2293_v56, %v1583_v1 }
 0xa30   : > { %v1588_v8 = vsel %vm1587_vm4, %v2293_v56, %v1584_v5 }
 0xa31   : > { %v1593_v25 = vsel %vm1590_vm5, %v1592_v7, %v1588_v8 }
 0xa32   : > { %v1596_v10 = vmul.f32 %v1593_v25, %v1553_v46 }
 0xa34   : > { %v1599_v11 = vpack.c.bf16 %v1596_v10, %v1595_v9 }
 0xa36   : > { %1672 = vmatmul.bf16.vlgmr.msra.gmra.mxu1 %v1599_v11 }
 0xab3   : > { %v1673_v12 = vpop.f32.mrf.mxu1 }
 0xab4   : > { %v1678_v13 = vadd.f32 %v1673_v12, %v1597_v4 }
 0xab6   : > { %1680 = vst.msk [vmem:[#allocation2] sm:$0xff] %vm1537_vm13, %v1678_v13 }
 0xaba   : > { %1685 = sbr.rel (%p2078_p0) target bundleno = 2763 (0xacb), region = 133 }
 0xabb   : > { %v1675_v15 = vpop.f32.mrf.mxu1 }
 0xabc   : > { %v1679_v16 = vadd.f32 %v1675_v15, %v1598_v14 }
 0xabe   : > { %1681 = vst.msk [vmem:[#allocation2 + $0x8] sm:$0xff] %vm1537_vm13, %v1679_v16 }
 0xabf   : > { %v1686_v17 = vld [vmem:[%s2720_s30] sm:$0xff]  ;;  %v1687_v21 = vld [vmem:[%s2720_s30 + $0x8] sm:$0xff] }
 0xac0   : > { %v1688_v18 = vld [vmem:[#allocation2] sm:$0xff] }
 0xac1   : > { %v1690_v19 = vadd.f32 %v1688_v18, %v1686_v17  ;;  %v2294_v20 = vld [vmem:[%s811_s8] ss:$0 sm:$0xff] }
 0xac3   : > { %v1696_v24 = vadd.f32 %v2294_v20, %v1690_v19 }
 0xac5   : > { %v1689_v22 = vld [vmem:[#allocation2 + $0x8] sm:$0xff]  ;;  %1698 = vst.msk [vmem:[%s2720_s30] sm:$0xff] %vm1537_vm13, %v1696_v24 }
 0xac6   : > { %v1691_v23 = vadd.f32 %v1689_v22, %v1687_v21 }
 0xac8   : > { %v1697_v26 = vadd.f32 %v2294_v20, %v1691_v23 }
 0xaca   : > { %1699 = vst.msk [vmem:[%s2720_s30 + $0x8] sm:$0xff] %vm1537_vm13, %v1697_v26 }
 0xacb PF: > { %s3075_s23 = sld [smem:[#allocation13_spill]]  ;;  %s1713_s8 = sshll.u32 %s2720_s30, 4  ;;  %s1714_s8 = int_to_ptr.vmem [resolvable:$true] %s1713_s8 }
 0xacc   : > { %s3076_s21 = sld [smem:[#allocation10_spill]] }
 0xacd   : > { %s3078_s12 = sld [smem:[#allocation39_spill]] }
 0xad1   : > { %s2113_s6 = sshll.u32 %s3075_s23, 4 }
 0xad2   : > { %s3079_s18 = sand.u32 1, %s3076_s21  }
 0xad3   : > { %s1712_s7 = scalar_lea.hbm %s3078_s12, %s2113_s6  ;;  %s1701_s24 = scalar_lea.sflag [#allocation7], %s3079_s18 }
 0xad4   : > { %s1715_s17 = sshll.u32 %s1712_s7, 4  ;;  %s2315_s2 = scalar_lea.hbm %s3078_s12, 32  ;;  %s1716_s17 = int_to_ptr.hbm [resolvable:$true] %s1715_s17 }
 0xad5   : > { %s2309_s15 = sshra.s32 %s1716_s17, 4  ;;  %s2310_s15 = int_to_ptr.hbm [resolvable:$true] %s2309_s15 }
 0xad6   : > { %s2311_s1 = scalar_lea.hbm %s2310_s15, 16  ;;  %p2316_p4 = scmp.lt.s32.totalorder %s2310_s15, %s3078_s12 }
 0xad7   : > { %p2312_p1 = scmp.ne.s32.totalorder %s2310_s15, %s2311_s1  ;;  %p2317_p5 = scmp.lt.s32.totalorder %s2315_s2, %s2311_s1 }
 0xad9   : > { %p2313_p2 = pnand %p2312_p1, %p2602_p9  ;;  %p2318_p6 = por %p2317_p5, %p2316_p4 }
 0xadb   : > { %p2314_p3 = pneg %p2313_p2 }
 0xadd   : > { %p2319_p7 = pnand %p2318_p6, %p2314_p3 }
 0xadf   : > { %2322 = shalt.err (!%p2319_p7)
}
 0xae0   : > { %s2434_s30 = smov 128   ;;  %s2435_s26 = smov 8  }
 0xae1   : > { %2114 = dma.vmem_to_hbm [thread:$0]  (%p2602_p9), %s1714_s8, 256, %s1716_s17, %s1701_s24, %s2434_s30, %s2434_s30, %s2435_s26  }
 0xae2 PF: > { %s3080_s22 = sld [smem:[#allocation17_spill]] }
 0xae3   : > { %s3081_s0 = sld [smem:[#allocation9_spill]] }
 0xae8   : > { %p2120_p8 = scmp.ge.s32.totalorder %s3080_s22, 2 }
 0xae9   : > { %s1730_s14 = sand.u32 1, %s3081_s0  }
 0xaea   : > { %p2117_p10 = pnand %p2120_p8, %p2618_p13  ;;  %s1731_s25 = scalar_lea.sflag [#allocation7], %s1730_s14 }
 0xaec   : > { %p2118_p11 = pneg %p2117_p10 }
 0xaee   : > { %2372 = dma.done.wait (%p2118_p11), %s1731_s25, 256  }
 0xaef   : > { %2374 = vsyncadd (%p2118_p11), %s1731_s25, 4294967040  ;;  %s28_s29 = sadd.s32 1, %s3080_s22   ;;  %s3083_s18 = sld [smem:[#allocation10_spill]] }
 0xaf0   : > { %p25_p12 = scmp.ge.s32.totalorder %s28_s29, 10   ;;  %s3084_s19 = sld [smem:[#allocation11_spill]] }
 0xaf1   : > { %s3085_s20 = sld [smem:[#allocation23_spill]] }
 0xaf2   : > { %s3086_s21 = sld [smem:[#allocation12_spill]] }
 0xaf3   : > { %s3087_s22 = sld [smem:[#allocation22_spill]] }
 0xaf4   : > { %s3088_s23 = sld [smem:[#allocation14_spill]] }
 0xaf5   : > { %s3089_s24 = sld [smem:[#allocation15_spill]]  ;;  %27 = sbr.rel (!%p25_p12) target bundleno = 22 (0x16), region = 209 }
 0xaf6   : > { %s3090_s25 = sld [smem:[#allocation16_spill]] }
 0xaf7   : > { %s3091_s26 = sld [smem:[#allocation18_spill]] }
 0xaf8   : > { %s3092_s27 = sld [smem:[#allocation19_spill]] }
 0xaf9   : > { %s3093_s28 = sld [smem:[#allocation21_spill]] }
 0xafa   :  { %1737 = vsyncpa [#allocation7], 1 }
 0xafb   :  { %1739 = vsyncpa [#allocation7 + $0x1], 1 }

</bundles_post_ra>
